<compile_context>
chip_gen: v7x
topology: tpu7x:2x2x1
jax: 0.10.0
libtpu: 0.0.40
codegen_flags: <defaults>
</compile_context>

<pallas_src>
import jax
import jax.numpy as jnp
from jax.experimental import pallas as pl
from jax.experimental.pallas import tpu as pltpu

K = 4            # kernel size
C_OUT = 3        # out channels
C_IN = 1         # in channels
W_LANES = 128    # lane-dense output width (output W_out must be <= W_LANES)


def conv_transpose_kernel(w_ref, b_ref, x_ref, o_ref, xpad_ref):
    # w_ref   : SMEM (C_OUT*K*K,) f32 -- spatially flipped kernel, flat [co, kh, kw]
    # b_ref   : SMEM (C_OUT,)     f32
    # x_ref   : VMEM (NB, H, W)   f32 -- unpadded batch block
    # o_ref   : VMEM (NB, C_OUT, H_out, W_LANES) f32 -- lane-dense output block
    # xpad_ref: VMEM (NB, H + 2*(K-1), W_LANES + K - 1) f32 scratch
    nb, h, w = x_ref.shape
    h_out = o_ref.shape[2]
    wl = o_ref.shape[3]

    # Zero the padded scratch every step (scratch persists across grid steps and the
    # border must stay zero), then drop the real input into its interior.
    xpad_ref[...] = jnp.zeros_like(xpad_ref)
    xpad_ref[:, K - 1:K - 1 + h, K - 1:K - 1 + w] = x_ref[...]

    # One f32 accumulator per output channel, lane-dense (wl = 128).
    accs = [jnp.full((nb, h_out, wl), b_ref[co], dtype=jnp.float32)
            for co in range(C_OUT)]

    # Each shifted window is materialized once and reused by all output channels.
    for kh in range(K):
        for kw in range(K):
            win = xpad_ref[:, kh:kh + h_out, kw:kw + wl]
            for co in range(C_OUT):
                accs[co] = accs[co] + win * w_ref[co * K * K + kh * K + kw]

    for co in range(C_OUT):
        o_ref[:, co] = accs[co]


def conv_transpose2d(x, weight, bias):
    """x: (N, 1, H, W) float32; weight: (1, 3, 4, 4) PyTorch layout (in, out, kH, kW);
    bias: (3,). Returns (N, 3, H+K-1, W+K-1) float32."""
    n, c_in, h, w = x.shape
    assert c_in == C_IN
    h_out, w_out = h + K - 1, w + K - 1
    assert w_out <= W_LANES, "spatial width too large for single-lane-tile layout"
    h_pad = h + 2 * (K - 1)

    # Batch blocking: 2 parallel grid steps when N is even (keeps both v7x
    # TensorCores busy), otherwise a single fat step.
    nb = n // 2 if (n % 2 == 0 and n >= 2) else n
    num_blocks = n // nb

    # Cheap parameter / layout prep in plain JAX (no spatial padding of x here).
    x_sq = x[:, 0, :, :].astype(jnp.float32)               # (N, H, W)
    w_flip = weight[0, :, ::-1, ::-1]                       # (C_OUT, K, K), flipped
    w_flat = w_flip.reshape(-1).astype(jnp.float32)         # (C_OUT*K*K,)
    b = bias.astype(jnp.float32)

    out_padded = pl.pallas_call(
        conv_transpose_kernel,
        out_shape=jax.ShapeDtypeStruct((n, C_OUT, h_out, W_LANES), jnp.float32),
        grid=(num_blocks,),
        in_specs=[
            pl.BlockSpec(memory_space=pltpu.MemorySpace.SMEM),        # w_flat
            pl.BlockSpec(memory_space=pltpu.MemorySpace.SMEM),        # bias
            pl.BlockSpec((nb, h, w), lambda i: (i, 0, 0)),            # x batch block
        ],
        out_specs=pl.BlockSpec((nb, C_OUT, h_out, W_LANES), lambda i: (i, 0, 0, 0)),
        scratch_shapes=[pltpu.VMEM((nb, h_pad, W_LANES + K - 1), jnp.float32)],
        compiler_params=pltpu.CompilerParams(dimension_semantics=("parallel",)),
    )(w_flat, b, x_sq)

    # Slice the lane-padded output back to the true spatial width.
    return out_padded[:, :, :, :w_out]


def reference_conv_transpose2d(x, weight, bias):
    """Independent reference: transposed conv (stride=1, pad=0) == full-padding conv
    with the flipped kernel."""
    w_flip = weight[:, :, ::-1, ::-1]                        # (in, out, kh, kw) flipped
    w_oihw = jnp.transpose(w_flip, (1, 0, 2, 3))             # (out, in, kh, kw)
    y = jax.lax.conv_general_dilated(
        x, w_oihw,
        window_strides=(1, 1),
        padding=((K - 1, K - 1), (K - 1, K - 1)),
        dimension_numbers=("NCHW", "OIHW", "NCHW"),
    )
    return y + bias[None, :, None, None]


if __name__ == "__main__":
    key = jax.random.PRNGKey(0)
    k_x, k_w, k_b = jax.random.split(key, 3)

    N, H, W = 2, 16, 16
    x = jax.random.normal(k_x, (N, C_IN, H, W), dtype=jnp.float32)

    # Deterministic parameter init (PyTorch ConvTranspose2d weight shape: (in, out, kH, kW)).
    fan = C_OUT * K * K
    bound = 1.0 / (fan ** 0.5)
    weight = jax.random.uniform(k_w, (C_IN, C_OUT, K, K), jnp.float32, -bound, bound)
    bias = jax.random.uniform(k_b, (C_OUT,), jnp.float32, -bound, bound)

    y = conv_transpose2d(x, weight, bias)
    y = jax.block_until_ready(y)

    y_ref = reference_conv_transpose2d(x, weight, bias)
    assert y.shape == (N, C_OUT, H + K - 1, W + K - 1), y.shape
    assert jnp.allclose(y, y_ref, atol=1e-5, rtol=1e-5), float(jnp.max(jnp.abs(y - y_ref)))

    print("KERNEL_OK")
</pallas_src>

<mosaic_0001>
module attributes {stable_mosaic.version = 11 : i64} {
  func.func @conv_transpose_kernel(%arg0: i32, %arg1: memref<48xf32, #tpu.memory_space<smem>>, %arg2: memref<3xf32, #tpu.memory_space<smem>>, %arg3: memref<1x16x16xf32, #tpu.memory_space<vmem>>, %arg4: memref<1x3x19x128xf32, #tpu.memory_space<vmem>>, %arg5: memref<1x22x131xf32, #tpu.memory_space<vmem>>) attributes {dimension_semantics = [#tpu.dimension_semantics<parallel>], iteration_bounds = array<i64: 2>, scalar_prefetch = 0 : i64, scratch_operands = 1 : i64, tpu.core_type = #tpu.core_type<tc>, window_params = [{transform_indices = @transform_0, window_bounds = array<i64: 48>}, {transform_indices = @transform_1, window_bounds = array<i64: 3>}, {transform_indices = @transform_2, window_bounds = array<i64: 1, 16, 16>}, {transform_indices = @transform_3, window_bounds = array<i64: 1, 3, 19, 128>}]} {
    %cst = arith.constant 0.000000e+00 : f32
    %0 = vector.broadcast %cst : f32 to vector<1x22x131xf32>
    %c0 = arith.constant 0 : index
    %c0_0 = arith.constant 0 : index
    %c0_1 = arith.constant 0 : index
    %1 = vector.load %arg5[%c0, %c0_0, %c0_1] : memref<1x22x131xf32, #tpu.memory_space<vmem>>, vector<1x22x131xf32>
    tpu.vector_store %arg5[%c0, %c0_0, %c0_1], %0 {strides = array<i32>} : memref<1x22x131xf32, #tpu.memory_space<vmem>>, vector<1x22x131xf32>,
    %c0_2 = arith.constant 0 : index
    %c0_3 = arith.constant 0 : index
    %c0_4 = arith.constant 0 : index
    %2 = vector.load %arg3[%c0_2, %c0_3, %c0_4] : memref<1x16x16xf32, #tpu.memory_space<vmem>>, vector<1x16x16xf32>
    %c0_5 = arith.constant 0 : index
    %c3 = arith.constant 3 : index
    %c3_6 = arith.constant 3 : index
    %3 = vector.load %arg5[%c0_5, %c3, %c3_6] : memref<1x22x131xf32, #tpu.memory_space<vmem>>, vector<1x16x16xf32>
    tpu.vector_store %arg5[%c0_5, %c3, %c3_6], %2 {strides = array<i32>} : memref<1x22x131xf32, #tpu.memory_space<vmem>>, vector<1x16x16xf32>,
    %c0_7 = arith.constant 0 : index
    %4 = memref.load %arg2[%c0_7] : memref<3xf32, #tpu.memory_space<smem>>
    %5 = vector.broadcast %4 : f32 to vector<1x19x128xf32>
    %c1 = arith.constant 1 : index
    %6 = memref.load %arg2[%c1] : memref<3xf32, #tpu.memory_space<smem>>
    %7 = vector.broadcast %6 : f32 to vector<1x19x128xf32>
    %c2 = arith.constant 2 : index
    %8 = memref.load %arg2[%c2] : memref<3xf32, #tpu.memory_space<smem>>
    %9 = vector.broadcast %8 : f32 to vector<1x19x128xf32>
    %c0_8 = arith.constant 0 : index
    %c0_9 = arith.constant 0 : index
    %c0_10 = arith.constant 0 : index
    %10 = vector.load %arg5[%c0_8, %c0_9, %c0_10] : memref<1x22x131xf32, #tpu.memory_space<vmem>>, vector<1x19x128xf32>
    %c0_11 = arith.constant 0 : index
    %11 = memref.load %arg1[%c0_11] : memref<48xf32, #tpu.memory_space<smem>>
    %12 = vector.broadcast %11 : f32 to vector<1x19x128xf32>
    %13 = arith.mulf %10, %12 : vector<1x19x128xf32>
    %14 = arith.addf %5, %13 : vector<1x19x128xf32>
    %c16 = arith.constant 16 : index
    %15 = memref.load %arg1[%c16] : memref<48xf32, #tpu.memory_space<smem>>
    %16 = vector.broadcast %15 : f32 to vector<1x19x128xf32>
    %17 = arith.mulf %10, %16 : vector<1x19x128xf32>
    %18 = arith.addf %7, %17 : vector<1x19x128xf32>
    %c32 = arith.constant 32 : index
    %19 = memref.load %arg1[%c32] : memref<48xf32, #tpu.memory_space<smem>>
    %20 = vector.broadcast %19 : f32 to vector<1x19x128xf32>
    %21 = arith.mulf %10, %20 : vector<1x19x128xf32>
    %22 = arith.addf %9, %21 : vector<1x19x128xf32>
    %c0_12 = arith.constant 0 : index
    %c0_13 = arith.constant 0 : index
    %c1_14 = arith.constant 1 : index
    %23 = vector.load %arg5[%c0_12, %c0_13, %c1_14] : memref<1x22x131xf32, #tpu.memory_space<vmem>>, vector<1x19x128xf32>
    %c1_15 = arith.constant 1 : index
    %24 = memref.load %arg1[%c1_15] : memref<48xf32, #tpu.memory_space<smem>>
    %25 = vector.broadcast %24 : f32 to vector<1x19x128xf32>
    %26 = arith.mulf %23, %25 : vector<1x19x128xf32>
    %27 = arith.addf %14, %26 : vector<1x19x128xf32>
    %c17 = arith.constant 17 : index
    %28 = memref.load %arg1[%c17] : memref<48xf32, #tpu.memory_space<smem>>
    %29 = vector.broadcast %28 : f32 to vector<1x19x128xf32>
    %30 = arith.mulf %23, %29 : vector<1x19x128xf32>
    %31 = arith.addf %18, %30 : vector<1x19x128xf32>
    %c33 = arith.constant 33 : index
    %32 = memref.load %arg1[%c33] : memref<48xf32, #tpu.memory_space<smem>>
    %33 = vector.broadcast %32 : f32 to vector<1x19x128xf32>
    %34 = arith.mulf %23, %33 : vector<1x19x128xf32>
    %35 = arith.addf %22, %34 : vector<1x19x128xf32>
    %c0_16 = arith.constant 0 : index
    %c0_17 = arith.constant 0 : index
    %c2_18 = arith.constant 2 : index
    %36 = vector.load %arg5[%c0_16, %c0_17, %c2_18] : memref<1x22x131xf32, #tpu.memory_space<vmem>>, vector<1x19x128xf32>
    %c2_19 = arith.constant 2 : index
    %37 = memref.load %arg1[%c2_19] : memref<48xf32, #tpu.memory_space<smem>>
    %38 = vector.broadcast %37 : f32 to vector<1x19x128xf32>
    %39 = arith.mulf %36, %38 : vector<1x19x128xf32>
    %40 = arith.addf %27, %39 : vector<1x19x128xf32>
    %c18 = arith.constant 18 : index
    %41 = memref.load %arg1[%c18] : memref<48xf32, #tpu.memory_space<smem>>
    %42 = vector.broadcast %41 : f32 to vector<1x19x128xf32>
    %43 = arith.mulf %36, %42 : vector<1x19x128xf32>
    %44 = arith.addf %31, %43 : vector<1x19x128xf32>
    %c34 = arith.constant 34 : index
    %45 = memref.load %arg1[%c34] : memref<48xf32, #tpu.memory_space<smem>>
    %46 = vector.broadcast %45 : f32 to vector<1x19x128xf32>
    %47 = arith.mulf %36, %46 : vector<1x19x128xf32>
    %48 = arith.addf %35, %47 : vector<1x19x128xf32>
    %c0_20 = arith.constant 0 : index
    %c0_21 = arith.constant 0 : index
    %c3_22 = arith.constant 3 : index
    %49 = vector.load %arg5[%c0_20, %c0_21, %c3_22] : memref<1x22x131xf32, #tpu.memory_space<vmem>>, vector<1x19x128xf32>
    %c3_23 = arith.constant 3 : index
    %50 = memref.load %arg1[%c3_23] : memref<48xf32, #tpu.memory_space<smem>>
    %51 = vector.broadcast %50 : f32 to vector<1x19x128xf32>
    %52 = arith.mulf %49, %51 : vector<1x19x128xf32>
    %53 = arith.addf %40, %52 : vector<1x19x128xf32>
    %c19 = arith.constant 19 : index
    %54 = memref.load %arg1[%c19] : memref<48xf32, #tpu.memory_space<smem>>
    %55 = vector.broadcast %54 : f32 to vector<1x19x128xf32>
    %56 = arith.mulf %49, %55 : vector<1x19x128xf32>
    %57 = arith.addf %44, %56 : vector<1x19x128xf32>
    %c35 = arith.constant 35 : index
    %58 = memref.load %arg1[%c35] : memref<48xf32, #tpu.memory_space<smem>>
    %59 = vector.broadcast %58 : f32 to vector<1x19x128xf32>
    %60 = arith.mulf %49, %59 : vector<1x19x128xf32>
    %61 = arith.addf %48, %60 : vector<1x19x128xf32>
    %c0_24 = arith.constant 0 : index
    %c1_25 = arith.constant 1 : index
    %c0_26 = arith.constant 0 : index
    %62 = vector.load %arg5[%c0_24, %c1_25, %c0_26] : memref<1x22x131xf32, #tpu.memory_space<vmem>>, vector<1x19x128xf32>
    %c4 = arith.constant 4 : index
    %63 = memref.load %arg1[%c4] : memref<48xf32, #tpu.memory_space<smem>>
    %64 = vector.broadcast %63 : f32 to vector<1x19x128xf32>
    %65 = arith.mulf %62, %64 : vector<1x19x128xf32>
    %66 = arith.addf %53, %65 : vector<1x19x128xf32>
    %c20 = arith.constant 20 : index
    %67 = memref.load %arg1[%c20] : memref<48xf32, #tpu.memory_space<smem>>
    %68 = vector.broadcast %67 : f32 to vector<1x19x128xf32>
    %69 = arith.mulf %62, %68 : vector<1x19x128xf32>
    %70 = arith.addf %57, %69 : vector<1x19x128xf32>
    %c36 = arith.constant 36 : index
    %71 = memref.load %arg1[%c36] : memref<48xf32, #tpu.memory_space<smem>>
    %72 = vector.broadcast %71 : f32 to vector<1x19x128xf32>
    %73 = arith.mulf %62, %72 : vector<1x19x128xf32>
    %74 = arith.addf %61, %73 : vector<1x19x128xf32>
    %c0_27 = arith.constant 0 : index
    %c1_28 = arith.constant 1 : index
    %c1_29 = arith.constant 1 : index
    %75 = vector.load %arg5[%c0_27, %c1_28, %c1_29] : memref<1x22x131xf32, #tpu.memory_space<vmem>>, vector<1x19x128xf32>
    %c5 = arith.constant 5 : index
    %76 = memref.load %arg1[%c5] : memref<48xf32, #tpu.memory_space<smem>>
    %77 = vector.broadcast %76 : f32 to vector<1x19x128xf32>
    %78 = arith.mulf %75, %77 : vector<1x19x128xf32>
    %79 = arith.addf %66, %78 : vector<1x19x128xf32>
    %c21 = arith.constant 21 : index
    %80 = memref.load %arg1[%c21] : memref<48xf32, #tpu.memory_space<smem>>
    %81 = vector.broadcast %80 : f32 to vector<1x19x128xf32>
    %82 = arith.mulf %75, %81 : vector<1x19x128xf32>
    %83 = arith.addf %70, %82 : vector<1x19x128xf32>
    %c37 = arith.constant 37 : index
    %84 = memref.load %arg1[%c37] : memref<48xf32, #tpu.memory_space<smem>>
    %85 = vector.broadcast %84 : f32 to vector<1x19x128xf32>
    %86 = arith.mulf %75, %85 : vector<1x19x128xf32>
    %87 = arith.addf %74, %86 : vector<1x19x128xf32>
    %c0_30 = arith.constant 0 : index
    %c1_31 = arith.constant 1 : index
    %c2_32 = arith.constant 2 : index
    %88 = vector.load %arg5[%c0_30, %c1_31, %c2_32] : memref<1x22x131xf32, #tpu.memory_space<vmem>>, vector<1x19x128xf32>
    %c6 = arith.constant 6 : index
    %89 = memref.load %arg1[%c6] : memref<48xf32, #tpu.memory_space<smem>>
    %90 = vector.broadcast %89 : f32 to vector<1x19x128xf32>
    %91 = arith.mulf %88, %90 : vector<1x19x128xf32>
    %92 = arith.addf %79, %91 : vector<1x19x128xf32>
    %c22 = arith.constant 22 : index
    %93 = memref.load %arg1[%c22] : memref<48xf32, #tpu.memory_space<smem>>
    %94 = vector.broadcast %93 : f32 to vector<1x19x128xf32>
    %95 = arith.mulf %88, %94 : vector<1x19x128xf32>
    %96 = arith.addf %83, %95 : vector<1x19x128xf32>
    %c38 = arith.constant 38 : index
    %97 = memref.load %arg1[%c38] : memref<48xf32, #tpu.memory_space<smem>>
    %98 = vector.broadcast %97 : f32 to vector<1x19x128xf32>
    %99 = arith.mulf %88, %98 : vector<1x19x128xf32>
    %100 = arith.addf %87, %99 : vector<1x19x128xf32>
    %c0_33 = arith.constant 0 : index
    %c1_34 = arith.constant 1 : index
    %c3_35 = arith.constant 3 : index
    %101 = vector.load %arg5[%c0_33, %c1_34, %c3_35] : memref<1x22x131xf32, #tpu.memory_space<vmem>>, vector<1x19x128xf32>
    %c7 = arith.constant 7 : index
    %102 = memref.load %arg1[%c7] : memref<48xf32, #tpu.memory_space<smem>>
    %103 = vector.broadcast %102 : f32 to vector<1x19x128xf32>
    %104 = arith.mulf %101, %103 : vector<1x19x128xf32>
    %105 = arith.addf %92, %104 : vector<1x19x128xf32>
    %c23 = arith.constant 23 : index
    %106 = memref.load %arg1[%c23] : memref<48xf32, #tpu.memory_space<smem>>
    %107 = vector.broadcast %106 : f32 to vector<1x19x128xf32>
    %108 = arith.mulf %101, %107 : vector<1x19x128xf32>
    %109 = arith.addf %96, %108 : vector<1x19x128xf32>
    %c39 = arith.constant 39 : index
    %110 = memref.load %arg1[%c39] : memref<48xf32, #tpu.memory_space<smem>>
    %111 = vector.broadcast %110 : f32 to vector<1x19x128xf32>
    %112 = arith.mulf %101, %111 : vector<1x19x128xf32>
    %113 = arith.addf %100, %112 : vector<1x19x128xf32>
    %c0_36 = arith.constant 0 : index
    %c2_37 = arith.constant 2 : index
    %c0_38 = arith.constant 0 : index
    %114 = vector.load %arg5[%c0_36, %c2_37, %c0_38] : memref<1x22x131xf32, #tpu.memory_space<vmem>>, vector<1x19x128xf32>
    %c8 = arith.constant 8 : index
    %115 = memref.load %arg1[%c8] : memref<48xf32, #tpu.memory_space<smem>>
    %116 = vector.broadcast %115 : f32 to vector<1x19x128xf32>
    %117 = arith.mulf %114, %116 : vector<1x19x128xf32>
    %118 = arith.addf %105, %117 : vector<1x19x128xf32>
    %c24 = arith.constant 24 : index
    %119 = memref.load %arg1[%c24] : memref<48xf32, #tpu.memory_space<smem>>
    %120 = vector.broadcast %119 : f32 to vector<1x19x128xf32>
    %121 = arith.mulf %114, %120 : vector<1x19x128xf32>
    %122 = arith.addf %109, %121 : vector<1x19x128xf32>
    %c40 = arith.constant 40 : index
    %123 = memref.load %arg1[%c40] : memref<48xf32, #tpu.memory_space<smem>>
    %124 = vector.broadcast %123 : f32 to vector<1x19x128xf32>
    %125 = arith.mulf %114, %124 : vector<1x19x128xf32>
    %126 = arith.addf %113, %125 : vector<1x19x128xf32>
    %c0_39 = arith.constant 0 : index
    %c2_40 = arith.constant 2 : index
    %c1_41 = arith.constant 1 : index
    %127 = vector.load %arg5[%c0_39, %c2_40, %c1_41] : memref<1x22x131xf32, #tpu.memory_space<vmem>>, vector<1x19x128xf32>
    %c9 = arith.constant 9 : index
    %128 = memref.load %arg1[%c9] : memref<48xf32, #tpu.memory_space<smem>>
    %129 = vector.broadcast %128 : f32 to vector<1x19x128xf32>
    %130 = arith.mulf %127, %129 : vector<1x19x128xf32>
    %131 = arith.addf %118, %130 : vector<1x19x128xf32>
    %c25 = arith.constant 25 : index
    %132 = memref.load %arg1[%c25] : memref<48xf32, #tpu.memory_space<smem>>
    %133 = vector.broadcast %132 : f32 to vector<1x19x128xf32>
    %134 = arith.mulf %127, %133 : vector<1x19x128xf32>
    %135 = arith.addf %122, %134 : vector<1x19x128xf32>
    %c41 = arith.constant 41 : index
    %136 = memref.load %arg1[%c41] : memref<48xf32, #tpu.memory_space<smem>>
    %137 = vector.broadcast %136 : f32 to vector<1x19x128xf32>
    %138 = arith.mulf %127, %137 : vector<1x19x128xf32>
    %139 = arith.addf %126, %138 : vector<1x19x128xf32>
    %c0_42 = arith.constant 0 : index
    %c2_43 = arith.constant 2 : index
    %c2_44 = arith.constant 2 : index
    %140 = vector.load %arg5[%c0_42, %c2_43, %c2_44] : memref<1x22x131xf32, #tpu.memory_space<vmem>>, vector<1x19x128xf32>
    %c10 = arith.constant 10 : index
    %141 = memref.load %arg1[%c10] : memref<48xf32, #tpu.memory_space<smem>>
    %142 = vector.broadcast %141 : f32 to vector<1x19x128xf32>
    %143 = arith.mulf %140, %142 : vector<1x19x128xf32>
    %144 = arith.addf %131, %143 : vector<1x19x128xf32>
    %c26 = arith.constant 26 : index
    %145 = memref.load %arg1[%c26] : memref<48xf32, #tpu.memory_space<smem>>
    %146 = vector.broadcast %145 : f32 to vector<1x19x128xf32>
    %147 = arith.mulf %140, %146 : vector<1x19x128xf32>
    %148 = arith.addf %135, %147 : vector<1x19x128xf32>
    %c42 = arith.constant 42 : index
    %149 = memref.load %arg1[%c42] : memref<48xf32, #tpu.memory_space<smem>>
    %150 = vector.broadcast %149 : f32 to vector<1x19x128xf32>
    %151 = arith.mulf %140, %150 : vector<1x19x128xf32>
    %152 = arith.addf %139, %151 : vector<1x19x128xf32>
    %c0_45 = arith.constant 0 : index
    %c2_46 = arith.constant 2 : index
    %c3_47 = arith.constant 3 : index
    %153 = vector.load %arg5[%c0_45, %c2_46, %c3_47] : memref<1x22x131xf32, #tpu.memory_space<vmem>>, vector<1x19x128xf32>
    %c11 = arith.constant 11 : index
    %154 = memref.load %arg1[%c11] : memref<48xf32, #tpu.memory_space<smem>>
    %155 = vector.broadcast %154 : f32 to vector<1x19x128xf32>
    %156 = arith.mulf %153, %155 : vector<1x19x128xf32>
    %157 = arith.addf %144, %156 : vector<1x19x128xf32>
    %c27 = arith.constant 27 : index
    %158 = memref.load %arg1[%c27] : memref<48xf32, #tpu.memory_space<smem>>
    %159 = vector.broadcast %158 : f32 to vector<1x19x128xf32>
    %160 = arith.mulf %153, %159 : vector<1x19x128xf32>
    %161 = arith.addf %148, %160 : vector<1x19x128xf32>
    %c43 = arith.constant 43 : index
    %162 = memref.load %arg1[%c43] : memref<48xf32, #tpu.memory_space<smem>>
    %163 = vector.broadcast %162 : f32 to vector<1x19x128xf32>
    %164 = arith.mulf %153, %163 : vector<1x19x128xf32>
    %165 = arith.addf %152, %164 : vector<1x19x128xf32>
    %c0_48 = arith.constant 0 : index
    %c3_49 = arith.constant 3 : index
    %c0_50 = arith.constant 0 : index
    %166 = vector.load %arg5[%c0_48, %c3_49, %c0_50] : memref<1x22x131xf32, #tpu.memory_space<vmem>>, vector<1x19x128xf32>
    %c12 = arith.constant 12 : index
    %167 = memref.load %arg1[%c12] : memref<48xf32, #tpu.memory_space<smem>>
    %168 = vector.broadcast %167 : f32 to vector<1x19x128xf32>
    %169 = arith.mulf %166, %168 : vector<1x19x128xf32>
    %170 = arith.addf %157, %169 : vector<1x19x128xf32>
    %c28 = arith.constant 28 : index
    %171 = memref.load %arg1[%c28] : memref<48xf32, #tpu.memory_space<smem>>
    %172 = vector.broadcast %171 : f32 to vector<1x19x128xf32>
    %173 = arith.mulf %166, %172 : vector<1x19x128xf32>
    %174 = arith.addf %161, %173 : vector<1x19x128xf32>
    %c44 = arith.constant 44 : index
    %175 = memref.load %arg1[%c44] : memref<48xf32, #tpu.memory_space<smem>>
    %176 = vector.broadcast %175 : f32 to vector<1x19x128xf32>
    %177 = arith.mulf %166, %176 : vector<1x19x128xf32>
    %178 = arith.addf %165, %177 : vector<1x19x128xf32>
    %c0_51 = arith.constant 0 : index
    %c3_52 = arith.constant 3 : index
    %c1_53 = arith.constant 1 : index
    %179 = vector.load %arg5[%c0_51, %c3_52, %c1_53] : memref<1x22x131xf32, #tpu.memory_space<vmem>>, vector<1x19x128xf32>
    %c13 = arith.constant 13 : index
    %180 = memref.load %arg1[%c13] : memref<48xf32, #tpu.memory_space<smem>>
    %181 = vector.broadcast %180 : f32 to vector<1x19x128xf32>
    %182 = arith.mulf %179, %181 : vector<1x19x128xf32>
    %183 = arith.addf %170, %182 : vector<1x19x128xf32>
    %c29 = arith.constant 29 : index
    %184 = memref.load %arg1[%c29] : memref<48xf32, #tpu.memory_space<smem>>
    %185 = vector.broadcast %184 : f32 to vector<1x19x128xf32>
    %186 = arith.mulf %179, %185 : vector<1x19x128xf32>
    %187 = arith.addf %174, %186 : vector<1x19x128xf32>
    %c45 = arith.constant 45 : index
    %188 = memref.load %arg1[%c45] : memref<48xf32, #tpu.memory_space<smem>>
    %189 = vector.broadcast %188 : f32 to vector<1x19x128xf32>
    %190 = arith.mulf %179, %189 : vector<1x19x128xf32>
    %191 = arith.addf %178, %190 : vector<1x19x128xf32>
    %c0_54 = arith.constant 0 : index
    %c3_55 = arith.constant 3 : index
    %c2_56 = arith.constant 2 : index
    %192 = vector.load %arg5[%c0_54, %c3_55, %c2_56] : memref<1x22x131xf32, #tpu.memory_space<vmem>>, vector<1x19x128xf32>
    %c14 = arith.constant 14 : index
    %193 = memref.load %arg1[%c14] : memref<48xf32, #tpu.memory_space<smem>>
    %194 = vector.broadcast %193 : f32 to vector<1x19x128xf32>
    %195 = arith.mulf %192, %194 : vector<1x19x128xf32>
    %196 = arith.addf %183, %195 : vector<1x19x128xf32>
    %c30 = arith.constant 30 : index
    %197 = memref.load %arg1[%c30] : memref<48xf32, #tpu.memory_space<smem>>
    %198 = vector.broadcast %197 : f32 to vector<1x19x128xf32>
    %199 = arith.mulf %192, %198 : vector<1x19x128xf32>
    %200 = arith.addf %187, %199 : vector<1x19x128xf32>
    %c46 = arith.constant 46 : index
    %201 = memref.load %arg1[%c46] : memref<48xf32, #tpu.memory_space<smem>>
    %202 = vector.broadcast %201 : f32 to vector<1x19x128xf32>
    %203 = arith.mulf %192, %202 : vector<1x19x128xf32>
    %204 = arith.addf %191, %203 : vector<1x19x128xf32>
    %c0_57 = arith.constant 0 : index
    %c3_58 = arith.constant 3 : index
    %c3_59 = arith.constant 3 : index
    %205 = vector.load %arg5[%c0_57, %c3_58, %c3_59] : memref<1x22x131xf32, #tpu.memory_space<vmem>>, vector<1x19x128xf32>
    %c15 = arith.constant 15 : index
    %206 = memref.load %arg1[%c15] : memref<48xf32, #tpu.memory_space<smem>>
    %207 = vector.broadcast %206 : f32 to vector<1x19x128xf32>
    %208 = arith.mulf %205, %207 : vector<1x19x128xf32>
    %209 = arith.addf %196, %208 : vector<1x19x128xf32>
    %c31 = arith.constant 31 : index
    %210 = memref.load %arg1[%c31] : memref<48xf32, #tpu.memory_space<smem>>
    %211 = vector.broadcast %210 : f32 to vector<1x19x128xf32>
    %212 = arith.mulf %205, %211 : vector<1x19x128xf32>
    %213 = arith.addf %200, %212 : vector<1x19x128xf32>
    %c47 = arith.constant 47 : index
    %214 = memref.load %arg1[%c47] : memref<48xf32, #tpu.memory_space<smem>>
    %215 = vector.broadcast %214 : f32 to vector<1x19x128xf32>
    %216 = arith.mulf %205, %215 : vector<1x19x128xf32>
    %217 = arith.addf %204, %216 : vector<1x19x128xf32>
    %c0_60 = arith.constant 0 : index
    %c0_61 = arith.constant 0 : index
    %c0_62 = arith.constant 0 : index
    %c0_63 = arith.constant 0 : index
    %218 = vector.load %arg4[%c0_60, %c0_61, %c0_62, %c0_63] : memref<1x3x19x128xf32, #tpu.memory_space<vmem>>, vector<1x1x19x128xf32>
    %219 = vector.shape_cast %218 : vector<1x1x19x128xf32> to vector<1x19x128xf32>
    %220 = vector.shape_cast %209 : vector<1x19x128xf32> to vector<1x1x19x128xf32>
    tpu.vector_store %arg4[%c0_60, %c0_61, %c0_62, %c0_63], %220 {strides = array<i32>} : memref<1x3x19x128xf32, #tpu.memory_space<vmem>>, vector<1x1x19x128xf32>,
    %c0_64 = arith.constant 0 : index
    %c1_65 = arith.constant 1 : index
    %c0_66 = arith.constant 0 : index
    %c0_67 = arith.constant 0 : index
    %221 = vector.load %arg4[%c0_64, %c1_65, %c0_66, %c0_67] : memref<1x3x19x128xf32, #tpu.memory_space<vmem>>, vector<1x1x19x128xf32>
    %222 = vector.shape_cast %221 : vector<1x1x19x128xf32> to vector<1x19x128xf32>
    %223 = vector.shape_cast %213 : vector<1x19x128xf32> to vector<1x1x19x128xf32>
    tpu.vector_store %arg4[%c0_64, %c1_65, %c0_66, %c0_67], %223 {strides = array<i32>} : memref<1x3x19x128xf32, #tpu.memory_space<vmem>>, vector<1x1x19x128xf32>,
    %c0_68 = arith.constant 0 : index
    %c2_69 = arith.constant 2 : index
    %c0_70 = arith.constant 0 : index
    %c0_71 = arith.constant 0 : index
    %224 = vector.load %arg4[%c0_68, %c2_69, %c0_70, %c0_71] : memref<1x3x19x128xf32, #tpu.memory_space<vmem>>, vector<1x1x19x128xf32>
    %225 = vector.shape_cast %224 : vector<1x1x19x128xf32> to vector<1x19x128xf32>
    %226 = vector.shape_cast %217 : vector<1x19x128xf32> to vector<1x1x19x128xf32>
    tpu.vector_store %arg4[%c0_68, %c2_69, %c0_70, %c0_71], %226 {strides = array<i32>} : memref<1x3x19x128xf32, #tpu.memory_space<vmem>>, vector<1x1x19x128xf32>,
    return
  }
  func.func @transform_0(%arg0: i32) -> i32 {
    %c0_i32 = arith.constant 0 : i32
    %c0_i32_0 = arith.constant 0 : i32
    return %c0_i32 : i32
  }
  func.func @transform_1(%arg0: i32) -> i32 {
    %c0_i32 = arith.constant 0 : i32
    %c0_i32_0 = arith.constant 0 : i32
    return %c0_i32 : i32
  }
  func.func @transform_2(%arg0: i32) -> (i32, i32, i32) {
    %c0_i32 = arith.constant 0 : i32
    %c0_i32_0 = arith.constant 0 : i32
    %c0_i32_1 = arith.constant 0 : i32
    return %arg0, %c0_i32, %c0_i32_0 : i32, i32, i32
  }
  func.func @transform_3(%arg0: i32) -> (i32, i32, i32, i32) {
    %c0_i32 = arith.constant 0 : i32
    %c0_i32_0 = arith.constant 0 : i32
    %c0_i32_1 = arith.constant 0 : i32
    %c0_i32_2 = arith.constant 0 : i32
    return %arg0, %c0_i32, %c0_i32_0, %c0_i32_1 : i32, i32, i32, i32
  }
}

</mosaic_0001>

<bundles_post_ra>
// kernel: tpu_custom_call.1
= control target key start
LH: loop header
LB: loop body
LE: loop exit
PB: predicated region body
PF: predicated region fallthrough
CT: control target
= control target key end

     0   :  { %8 = vsyncpa [#allocation5], 0  ;;  %s4358_s0 = inlined_call_operand.hbm [shape: f32[48], index: 0, kind: input, shape index: {}]   ;;  %s4359_s1 = inlined_call_operand.vmem [shape: f32[3], index: 1, kind: input, shape index: {}]   ;;  %s4360_s2 = inlined_call_operand.hbm [shape: f32[2,16,16], index: 2, kind: input, shape index: {}]   ;;  %s4361_s3 = inlined_call_operand.vmem [shape: f32[2,3,19,128], index: 3, kind: output, shape index: {}]  }
   0x1   :  { %9 = vsyncpa [#allocation6], 0 }
   0x2   :  { %10 = vsyncpa [#allocation4], 0 }
   0x3   :  { %12 = vsyncpa [#allocation4 + $0x1], 0  ;;  %s2388_s12 = smov 0   ;;  %s2390_s13 = smov 0  }
   0x4   :  { %s2392_s14 = smov 0   ;;  %s2394_s15 = smov 0  }
   0x5 LB: > { %s2407_s16 = sadd.s32 4294967295, %s2356_s15   ;;  %s2410_s17 = sadd.s32 1, %s2356_s15   ;;  %s2356_s15 = sphi %s2394_s15, %s4617_s15   ;;  %s2352_s14 = sphi %s2392_s14, %s4616_s14   ;;  %s2348_s13 = sphi %s2390_s13, %s4615_s13   ;;  %s2344_s12 = sphi %s2388_s12, %s4614_s12  }
   0x6   : > { %s64_s18 = ssub.s32 %s2356_s15, %s2410_s17  ;;  %s67_s19 = sadd.s32 1, %s2352_s14 }
   0x7   : > { %p65_p0 = scmp.eq.s32.totalorder %s64_s18, 0  ;;  %p74_p1 = scmp.ne.s32.totalorder %s2352_s14, %s2348_s13 }
   0x8   : > { %p75_p2 = scmp.eq.s32.totalorder %s2356_s15, 0  ;;  %p80_p3 = scmp.ne.s32.totalorder %s2348_s13, %s2344_s12 }
   0x9   : > { %s2420_s20 = scalar_select %p65_p0, %s2352_s14, %s67_s19  }
   0xa   : > { %p76_p4 = por %p75_p2, %p74_p1  ;;  %p4362_p5 = scmp.eq.s32.totalorder %s2407_s16, 0 }
   0xb   : > { %p2114_p6 = scmp.ge.s32.totalorder %s2356_s15, 1  ;;  %p117_p7 = scmp.lt.s32.totalorder %s2356_s15, 3 }
   0xc   : > { %p2427_p8 = por %p4362_p5, %p80_p3  ;;  %p2208_p10 = scmp.lt.s32.totalorder %s2356_s15, 2 }
   0xd   : > { %p2431_p9 = pnand %p2114_p6, %p117_p7  ;;  %s139_s25 = sshll.u32 %s4359_s1, 4  ;;  %s140_s25 = int_to_ptr.vmem [resolvable:$true] %s139_s25 }
   0xe   : > { %s4381_s21 = scalar_select %p2427_p8, 1, 0 }
   0xf   : > { %p2195_p11 = pneg %p2431_p9  ;;  %p2441_p12 = pnand %p2208_p10, %p76_p4 }
  0x10   : > { %s150_s28 = sand.u32 1, %s2352_s14   ;;  %s2256_s4 = scalar_lea.hbm %s4358_s0, 16 }
  0x11   : > { %p2447_p13 = pnand %p2195_p11, %p4362_p5  ;;  %p2257_p0 = scmp.ne.s32.totalorder %s4358_s0, %s2256_s4 }
  0x12   : > { %p2263_p4 = scmp.lt.u32.totalorder %s2256_s4, %s4358_s0 }
  0x13   : > { %p2258_p1 = pneg %p2447_p13 }
  0x15   : > { %p2259_p2 = pnand %p2258_p1, %p2257_p0 }
  0x17   : > { %p2260_p3 = pneg %p2259_p2 }
  0x19   : > { %p2265_p6 = pnand %p2263_p4, %p2260_p3 }
  0x1b   : > { %2268 = shalt.err (!%p2265_p6)
}
  0x1c   : > { %s2358_s9 = smov [#allocation3]   ;;  %s2269_s12 = scalar_lea.vmem %s140_s25, 16 }
  0x1d   : > { %2198 = dma.hbm_to_smem (!%p2447_p13), %s4358_s0, 16, %s2358_s9, [#allocation5]  }
  0x1e   : > { %p2270_p7 = scmp.ne.s32.totalorder %s140_s25, %s2269_s12  ;;  %p2277_p5 = scmp.lt.s32.totalorder %s140_s25, %s140_s25 }
  0x1f   : > { %p2278_p0 = scmp.lt.s32.totalorder %s2269_s12, %s2269_s12 }
  0x20   : > { %p2272_p10 = pnand %p2270_p7, %p2258_p1 }
  0x21   : > { %p2279_p2 = por %p2278_p0, %p2277_p5 }
  0x22   : > { %p2273_p11 = pneg %p2272_p10 }
  0x24   : > { %p2280_p8 = pnand %p2279_p2, %p2273_p11 }
  0x26   : > { %2283 = shalt.err (!%p2280_p8)
}
  0x27   : > { %s2359_s18 = smov [#allocation7]   ;;  %s2118_s19 = sshll.u32 %s150_s28, 4 }
  0x28   : > { %2201 = dma.vmem_to_smem (!%p2447_p13), %s140_s25, 16, %s2359_s18, [#allocation6]  }
  0x29   : > { %s2183_s23 = sshll.u32 %s2356_s15, 8  ;;  %s154_s4 = scalar_lea.vmem [#allocation8], %s2118_s19 }
  0x2a   : > { %s2474_s30 = scalar_lea.hbm %s4360_s2, %s2183_s23  ;;  %s161_s5 = sshll.u32 %s154_s4, 4  ;;  %s2476_s5 = int_to_ptr.vmem [resolvable:$true] %s161_s5 }
  0x2b   : > { %s2478_s27 = scalar_lea.sflag [#allocation4], %s150_s28  ;;  %s2284_s6 = scalar_lea.hbm %s2474_s30, 256 }
  0x2c   : > { %p2285_p5 = scmp.ne.s32.totalorder %s2474_s30, %s2284_s6  ;;  %p2286_p8 = pneg %p2441_p12 }
  0x2d   : > { %s2289_s7 = scalar_lea.hbm %s4360_s2, 512  ;;  %p2290_p3 = scmp.lt.u32.totalorder %s2474_s30, %s4360_s2 }
  0x2e   : > { %p2287_p13 = pnand %p2286_p8, %p2285_p5  ;;  %p2291_p4 = scmp.lt.u32.totalorder %s2289_s7, %s2284_s6 }
  0x2f   : > { %p2293_p7 = scmp.lt.u32.totalorder %s2284_s6, %s2474_s30 }
  0x30   : > { %p2288_p1 = pneg %p2287_p13  ;;  %p2292_p6 = por %p2291_p4, %p2290_p3 }
  0x32   : > { %p2294_p10 = por %p2293_p7, %p2292_p6 }
  0x34   : > { %p2295_p11 = pnand %p2294_p10, %p2288_p1 }
  0x36   : > { %2298 = shalt.err (!%p2295_p11)
}
  0x37   : > { %s2299_s28 = scalar_lea.vmem %s2476_s5, 256  ;;  %s2360_s10 = smov [#allocation8]  }
  0x38   : > { %p2300_p0 = scmp.ne.s32.totalorder %s2476_s5, %s2299_s28  ;;  %s2304_s11 = sshll.u32 %s2360_s10, 4  ;;  %s2305_s11 = int_to_ptr.vmem [resolvable:$false] %s2304_s11 }
  0x39   : > { %s2306_s12 = scalar_lea.vmem %s2305_s11, 512  ;;  %p2307_p13 = scmp.lt.s32.totalorder %s2476_s5, %s2305_s11 }
  0x3a   : > { %p2302_p2 = pnand %p2300_p0, %p2286_p8  ;;  %p2308_p3 = scmp.lt.s32.totalorder %s2306_s12, %s2299_s28 }
  0x3c   : > { %p2303_p5 = pneg %p2302_p2  ;;  %p2309_p4 = por %p2308_p3, %p2307_p13 }
  0x3e   : > { %p2310_p6 = pnand %p2309_p4, %p2303_p5 }
  0x40   : > { %2313 = shalt.err (!%p2310_p6)
}
  0x41   : > { %s2361_s18 = smov 128   ;;  %s2362_s19 = smov 8  }
  0x42   : > { %2205 = dma.hbm_to_vmem [thread:$0]  (!%p2441_p12), %s2474_s30, 256, %s2476_s5, %s2478_s27, %s2361_s18, %s2361_s18, %s2362_s19  }
  0x43   : > { %173 = sbr.rel (%p2431_p9) target bundleno = 762 (0x2fa), region = 32 }
  0x4a   : > { %p4385_p8 = scmp.eq.s32.totalorder %s2407_s16, 0 }
  0x4c   : > { %2331 = dma.done.wait (%p4385_p8), [#allocation5], 16   ;;  %p4386_p1 = pmov %p4385_p8 }
  0x4e   : > { %2333 = vsyncadd (%p4386_p1), [#allocation5], 4294967280  ;;  %p4387_p7 = pmov %p4386_p1 }
  0x4f   : > { %p4388_p10 = pmov %p4386_p1 }
  0x50   : > { %2335 = dma.done.wait (%p4387_p7), [#allocation6], 16  }
  0x51   : > { %2337 = vsyncadd (%p4388_p10), [#allocation6], 4294967280  ;;  %s183_s23 = sand.u32 1, %s2348_s13   ;;  %p4389_p12 = scmp.ne.s32.totalorder %s4381_s21, 0 }
  0x52   : > { %s2124_s26 = sshll.u32 %s183_s23, 4  ;;  %s184_s24 = scalar_lea.sflag [#allocation4], %s183_s23 }
  0x53   : > { %s187_s29 = scalar_lea.vmem [#allocation8], %s2124_s26 }
  0x54   : > { %2339 = dma.done.wait (%p4389_p12), %s184_s24, 256  }
  0x55   : > { %2341 = vsyncadd (%p4389_p12), %s184_s24, 4294967040 }
  0x56   : > { %192 = sfence }
  0x57   : > { %v224_v0 = vld [vmem:[%s187_s29] sm:$0xff]  ;;  %v225_v1 = vld [vmem:[%s187_s29 + $0x8] sm:$0xff]  ;;  %vm217_vm0 = vcmask 23552   ;;  %vm228_vm1 = vcmask 1042432   ;;  %v2363_v4 = vmov 0.0   ;;  %s2130_s22 = sld [smem:[#allocation3 + $0x1]] }
  0x58   : > { %v229_v2 = vrot.slane %v224_v0, 5  ;;  %v230_v3 = vrot.slane %v225_v1, 5  ;;  %218 = vst.msk [vmem:[#allocation2 + $0x8] sm:$0xff] %vm217_vm0, %v2363_v4  ;;  %220 = vst.msk [vmem:[#allocation2 + $0x18] sm:$0xff] %vm217_vm0, %v2363_v4  ;;  %vm222_vm2 = vcmask 21504   ;;  %s2364_s30 = smov 3  }
  0x59   : > { %216 = vst [vmem:[#allocation2] sm:$0xff] %v2363_v4  ;;  %219 = vst [vmem:[#allocation2 + $0x10] sm:$0xff] %v2363_v4  ;;  %s2131_s21 = sld [smem:[#allocation3 + $0x11]]  ;;  %s2365_s4 = smov 127   ;;  %vm241_vm3 = vcmask 154651   ;;  %vm245_vm4 = vcmask 149528  }
  0x5a   : > { %221 = vst [vmem:[#allocation2 + $0x20] sm:$0x3f] %v2363_v4  ;;  %223 = vst.msk [vmem:[#allocation2 + $0x28] sm:$0x3f] %vm222_vm2, %v2363_v4  ;;  %232 = vrot.lane.b32.xlu0 %v229_v2, %s2364_s30  ;;  %236 = vrot.lane.b32.xlu1 %v230_v3, %s2364_s30  ;;  %v231_v5 = vsel %vm228_vm1, %v229_v2, %v230_v3  ;;  %s2132_s5 = sld [smem:[#allocation3 + $0x21]]  ;;  %s2133_s27 = sld [smem:[#allocation3 + $0x2]] }
  0x5b   : > { %s2134_s6 = sld [smem:[#allocation3 + $0x12]]  ;;  %s2366_s15 = smov 126   ;;  %vm614_vm5 = vcmask 1046528   ;;  %vm243_vm6 = vcmask 154648   ;;  %vm1083_vm7 = vcmask 1045504   ;;  %vm1552_vm8 = vcmask 1044480  }
  0x5c   : > { %s2135_s25 = sld [smem:[#allocation3 + $0x22]]  ;;  %s2136_s7 = sld [smem:[#allocation3 + $0x3]]  ;;  %vm312_vm9 = vcmask 1039360   ;;  %vm418_vm10 = vcmask 1031168   ;;  %vm524_vm11 = vcmask 1022976  }
  0x5d   : > { %v2521_v6 = vstv %s2130_s22  ;;  %s2137_s8 = sld [smem:[#allocation3 + $0x13]]  ;;  %s2367_s9 = smov 125  }
  0x5e   : > { %234 = vrot.lane.b32.xlu0 %v231_v5, %s2364_s30  ;;  %s2138_s28 = sld [smem:[#allocation3 + $0x23]]  ;;  %s2142_s10 = sld [smem:[#allocation3 + $0x5]] }
  0x5f   : > { %v2523_v7 = vld [vmem:[#allocation2 + $0x8] sm:$0xff]  ;;  %v2525_v8 = vld [vmem:[#allocation2 + $0x18] sm:$0xff]  ;;  %v2537_v13 = vstv %s2131_s21  ;;  %s2143_s11 = sld [smem:[#allocation3 + $0x15]]  ;;  %s2145_s18 = sld [smem:[#allocation3 + $0x6]] }
  0x60   : > { %v289_v9 = vmul.f32 %v2521_v6, %v2523_v7  ;;  %v291_v10 = vmul.f32 %v2521_v6, %v2525_v8  ;;  %v325_v14 = vmul.f32 %v2537_v13, %v2523_v7  ;;  %v327_v15 = vmul.f32 %v2537_v13, %v2525_v8  ;;  %v2619_v43 = vld [vmem:[#allocation2 + $0x8] sm:$0xfe]  ;;  %s2144_s12 = sld [smem:[#allocation3 + $0x25]]  ;;  %s2148_s19 = sld [smem:[#allocation3 + $0x7]] }
  0x61   : > { %v2532_v11 = vld [vmem:[#allocation2 + $0x28] sm:$0x7]  ;;  %v2548_v17 = vstv %s2132_s5  ;;  %v2559_v21 = vstv %s2133_s27  ;;  %v2570_v25 = vstv %s2134_s6  ;;  %s2149_s23 = sld [smem:[#allocation3 + $0x17]]  ;;  %s2146_s24 = sld [smem:[#allocation3 + $0x16]] }
  0x62   : > { %302 = vrot.lane.b32.xlu0 %v289_v9, %s2365_s4  ;;  %v293_v12 = vmul.f32 %v2521_v6, %v2532_v11  ;;  %v329_v16 = vmul.f32 %v2537_v13, %v2532_v11  ;;  %v360_v18 = vmul.f32 %v2548_v17, %v2523_v7  ;;  %v362_v19 = vmul.f32 %v2548_v17, %v2525_v8  ;;  %v2630_v48 = vld [vmem:[#allocation2 + $0x28] sm:$0xf]  ;;  %s2150_s26 = sld [smem:[#allocation3 + $0x27]]  ;;  %s2147_s29 = sld [smem:[#allocation3 + $0x26]] }
  0x63   : > { %v364_v20 = vmul.f32 %v2548_v17, %v2532_v11  ;;  %v395_v22 = vmul.f32 %v2559_v21, %v2523_v7  ;;  %v397_v23 = vmul.f32 %v2559_v21, %v2525_v8  ;;  %v399_v24 = vmul.f32 %v2559_v21, %v2532_v11  ;;  %s2154_s22 = sld [smem:[#allocation3 + $0x9]]  ;;  %s2157_s5 = sld [smem:[#allocation3 + $0xa]] }
  0x64   : > { %v431_v26 = vmul.f32 %v2570_v25, %v2523_v7  ;;  %v433_v27 = vmul.f32 %v2570_v25, %v2525_v8  ;;  %v435_v28 = vmul.f32 %v2570_v25, %v2532_v11  ;;  %v2581_v29 = vstv %s2135_s25  ;;  %s2155_s30 = sld [smem:[#allocation3 + $0x19]]  ;;  %s2158_s27 = sld [smem:[#allocation3 + $0x1a]] }
  0x65   : > { %v466_v30 = vmul.f32 %v2581_v29, %v2523_v7  ;;  %v468_v31 = vmul.f32 %v2581_v29, %v2525_v8  ;;  %v470_v32 = vmul.f32 %v2581_v29, %v2532_v11  ;;  %v2592_v33 = vstv %s2136_s7  ;;  %s2156_s21 = sld [smem:[#allocation3 + $0x29]]  ;;  %s2159_s6 = sld [smem:[#allocation3 + $0x2a]] }
  0x66   : > { %306 = vrot.lane.b32.xlu0 %v291_v10, %s2365_s4  ;;  %v501_v34 = vmul.f32 %v2592_v33, %v2523_v7  ;;  %v503_v35 = vmul.f32 %v2592_v33, %v2525_v8  ;;  %v505_v36 = vmul.f32 %v2592_v33, %v2532_v11  ;;  %v2603_v37 = vstv %s2137_s8  ;;  %s2160_s25 = sld [smem:[#allocation3 + $0xb]]  ;;  %p211_p9 = scmp.lt.s32.totalorder %s2407_s16, 1 }
  0x67   : > { %v537_v38 = vmul.f32 %v2603_v37, %v2523_v7  ;;  %v539_v39 = vmul.f32 %v2603_v37, %v2525_v8  ;;  %v541_v40 = vmul.f32 %v2603_v37, %v2532_v11  ;;  %v2614_v41 = vstv %s2138_s28  ;;  %s2161_s7 = sld [smem:[#allocation3 + $0x1b]]  ;;  %s2166_s28 = sld [smem:[#allocation3 + $0xd]] }
  0x68   : > { %v572_v42 = vmul.f32 %v2614_v41, %v2523_v7  ;;  %v574_v44 = vmul.f32 %v2614_v41, %v2525_v8  ;;  %v2624_v45 = vstv %s2142_s10  ;;  %v576_v49 = vmul.f32 %v2614_v41, %v2532_v11  ;;  %s2162_s8 = sld [smem:[#allocation3 + $0x2b]]  ;;  %s2167_s10 = sld [smem:[#allocation3 + $0x1d]] }
  0x69   : > { %v671_v46 = vmul.f32 %v2624_v45, %v2619_v43  ;;  %v673_v47 = vmul.f32 %v2624_v45, %v2525_v8  ;;  %v675_v52 = vmul.f32 %v2624_v45, %v2630_v48  ;;  %v2640_v57 = vstv %s2143_s11  ;;  %s2168_s11 = sld [smem:[#allocation3 + $0x2d]]  ;;  %s4619_s16 = smov (!%p211_p9, %s2407_s16), 1 }
  0x6a   : > { %310 = vrot.lane.b32.xlu0 %v293_v12, %s2365_s4  ;;  %v716_v59 = vmul.f32 %v2640_v57, %v2619_v43  ;;  %v718_v60 = vmul.f32 %v2640_v57, %v2525_v8  ;;  %v720_v0 = vmul.f32 %v2640_v57, %v2630_v48 }
  0x6b   : > { %v685_v50 = vrot.slane %v671_v46, 1  ;;  %v686_v51 = vrot.slane %v673_v47, 1  ;;  %v690_v54 = vrot.slane %v675_v52, 1 }
  0x6c   : > { %v730_v62 = vrot.slane %v716_v59, 1  ;;  %v731_v63 = vrot.slane %v718_v60, 1  ;;  %v735_v9 = vrot.slane %v720_v0, 1 }
  0x6d   : > { %v687_v53 = vsel %vm614_vm5, %v685_v50, %v686_v51  ;;  %v691_v58 = vsel %vm614_vm5, %v686_v51, %v690_v54 }
  0x6e   : > { %338 = vrot.lane.b32.xlu0 %v325_v14, %s2365_s4  ;;  %v732_v7 = vsel %vm614_vm5, %v730_v62, %v731_v63  ;;  %v736_v11 = vsel %vm614_vm5, %v731_v63, %v735_v9  ;;  %v2739_v63 = vstv %s2150_s26  ;;  %s2173_s26 = sld [smem:[#allocation3 + $0x1f]] }
  0x72   : > { %342 = vrot.lane.b32.xlu0 %v327_v15, %s2365_s4 }
  0x76   : > { %346 = vrot.lane.b32.xlu0 %v329_v16, %s2365_s4  ;;  %v2676_v16 = vstv %s2144_s12  ;;  %s2169_s12 = sld [smem:[#allocation3 + $0xe]] }
  0x7a   : > { %373 = vrot.lane.b32.xlu0 %v360_v18, %s2365_s4 }
  0x7e   : > { %377 = vrot.lane.b32.xlu0 %v362_v19, %s2365_s4  ;;  %v761_v19 = vmul.f32 %v2676_v16, %v2619_v43 }
  0x82   : > { %381 = vrot.lane.b32.xlu0 %v364_v20, %s2365_s4  ;;  %v763_v20 = vmul.f32 %v2676_v16, %v2525_v8 }
  0x86   : > { %408 = vrot.lane.b32.xlu0 %v395_v22, %s2366_s15  ;;  %v775_v22 = vrot.slane %v761_v19, 1 }
  0x8a   : > { %412 = vrot.lane.b32.xlu0 %v397_v23, %s2366_s15  ;;  %v776_v23 = vrot.slane %v763_v20, 1 }
  0x8e   : > { %416 = vrot.lane.b32.xlu0 %v399_v24, %s2366_s15 }
  0x92   : > { %444 = vrot.lane.b32.xlu0 %v431_v26, %s2366_s15  ;;  %v765_v26 = vmul.f32 %v2676_v16, %v2630_v48 }
  0x96   : > { %448 = vrot.lane.b32.xlu0 %v433_v27, %s2366_s15 }
  0x9a   : > { %452 = vrot.lane.b32.xlu0 %v435_v28, %s2366_s15  ;;  %v777_v28 = vsel %vm614_vm5, %v775_v22, %v776_v23 }
  0x9e   : > { %479 = vrot.lane.b32.xlu0 %v466_v30, %s2366_s15  ;;  %v780_v30 = vrot.slane %v765_v26, 1 }
  0xa2   : > { %483 = vrot.lane.b32.xlu0 %v468_v31, %s2366_s15  ;;  %v2694_v31 = vstv %s2145_s18  ;;  %s2170_s18 = sld [smem:[#allocation3 + $0x1e]] }
  0xa3   : > { %v810_v47 = vmul.f32 %v2694_v31, %v2630_v48 }
  0xa6   : > { %487 = vrot.lane.b32.xlu0 %v470_v32, %s2366_s15  ;;  %v806_v32 = vmul.f32 %v2694_v31, %v2619_v43 }
  0xaa   : > { %514 = vrot.lane.b32.xlu0 %v501_v34, %s2367_s9  ;;  %v808_v34 = vmul.f32 %v2694_v31, %v2525_v8 }
  0xac   : > { %v821_v46 = vrot.slane %v808_v34, 1 }
  0xae   : > { %518 = vrot.lane.b32.xlu0 %v503_v35, %s2367_s9 }
  0xb2   : > { %522 = vrot.lane.b32.xlu0 %v505_v36, %s2367_s9  ;;  %v781_v36 = vsel %vm614_vm5, %v776_v23, %v780_v30 }
  0xb6   : > { %550 = vrot.lane.b32.xlu0 %v537_v38, %s2367_s9 }
  0xba   : > { %554 = vrot.lane.b32.xlu0 %v539_v39, %s2367_s9 }
  0xbe   : > { %558 = vrot.lane.b32.xlu0 %v541_v40, %s2367_s9  ;;  %v2708_v40 = vstv %s2148_s19  ;;  %s2171_s19 = sld [smem:[#allocation3 + $0x2e]] }
  0xc2   : > { %585 = vrot.lane.b32.xlu0 %v572_v42, %s2367_s9 }
  0xc6   : > { %589 = vrot.lane.b32.xlu0 %v574_v44, %s2367_s9  ;;  %v820_v44 = vrot.slane %v806_v32, 1 }
  0xca   : > { %593 = vrot.lane.b32.xlu0 %v576_v49, %s2367_s9 }
  0xcc   : > { %v233_v55 = vpop.permute.xlu0 %232  ;;  %v237_v56 = vpop.permute.xlu1 %236 }
  0xcd   : > { %242 = vst.msk [vmem:[#allocation2] sm:$0xf8] %vm241_vm3, %v233_v55  ;;  %v825_v55 = vrot.slane %v810_v47, 1 }
  0xce   : > { %246 = vst.msk [vmem:[#allocation2 + $0x20] sm:$0x7] %vm245_vm4, %v237_v56  ;;  %694 = vrot.lane.b32.xlu0 %v687_v53, %s2365_s4  ;;  %v822_v56 = vsel %vm614_vm5, %v820_v44, %v821_v46 }
  0xd0   : > { %v235_v61 = vpop.permute.xlu0 %234 }
  0xd1   : > { %244 = vst.msk [vmem:[#allocation2 + $0x10] sm:$0xff] %vm243_vm6, %v235_v61 }
  0xd2   : > { %698 = vrot.lane.b32.xlu0 %v691_v58, %s2365_s4 }
  0xd4   : > { %v2650_v1 = vld [vmem:[#allocation2] sm:$0xff]  ;;  %v2654_v3 = vpop.permute.xlu0 %302 }
  0xd5   : > { %v2652_v2 = vld [vmem:[#allocation2 + $0x20] sm:$0x7]  ;;  %v288_v4 = vmul.f32 %v2521_v6, %v2650_v1  ;;  %v324_v14 = vmul.f32 %v2537_v13, %v2650_v1  ;;  %v359_v27 = vmul.f32 %v2548_v17, %v2650_v1  ;;  %v394_v52 = vmul.f32 %v2559_v21, %v2650_v1 }
  0xd6   : > { %702 = vrot.lane.b32.xlu0 %v690_v54, %s2365_s4  ;;  %v292_v5 = vmul.f32 %v2521_v6, %v2652_v2  ;;  %v328_v18 = vmul.f32 %v2537_v13, %v2652_v2  ;;  %v363_v38 = vmul.f32 %v2548_v17, %v2652_v2  ;;  %v2706_v39 = vld [vmem:[#allocation2] sm:$0xfe]  ;;  %v2726_v54 = vstv %s2149_s23  ;;  %s2172_s23 = sld [smem:[#allocation3 + $0xf]] }
  0xd7   : > { %300 = vrot.lane.b32.xlu1 %v288_v4, %s2365_s4  ;;  %v2718_v50 = vld [vmem:[#allocation2 + $0x20] sm:$0xf]  ;;  %v940_v51 = vmul.f32 %v2708_v40, %v2706_v39  ;;  %v985_v62 = vmul.f32 %v2726_v54, %v2706_v39  ;;  %v398_v0 = vmul.f32 %v2559_v21, %v2652_v2  ;;  %v430_v32 = vmul.f32 %v2570_v25, %v2650_v1 }
  0xd8   : > { %v2663_v10 = vpop.permute.xlu0 %306  ;;  %v2710_v42 = vld [vmem:[#allocation2 + $0x10] sm:$0xff]  ;;  %v2733_v60 = vmul.f32 %v2708_v40, %v2718_v50 }
  0xd9   : > { %4390 = vst [vmem:[#allocation12_spill] sm:$0xff] %v2663_v10  ;;  %v942_v53 = vmul.f32 %v2708_v40, %v2710_v42  ;;  %v952_v58 = vrot.slane %v940_v51, 1 }
  0xda   : > { %739 = vrot.lane.b32.xlu0 %v732_v7, %s2365_s4  ;;  %v987_v7 = vmul.f32 %v2726_v54, %v2710_v42 }
  0xdb   : > { %308 = vrot.lane.b32.xlu1 %v292_v5, %s2365_s4  ;;  %v953_v59 = vrot.slane %v942_v53, 1  ;;  %v4366_v5 = vrot.slane %v2733_v60, 1 }
  0xdc   : > { %v2668_v12 = vpop.permute.xlu0 %310  ;;  %v998_v23 = vrot.slane %v987_v7, 1 }
  0xdd   : > { %4391 = vst [vmem:[#allocation13_spill] sm:$0xff] %v2668_v12  ;;  %v2744_v4 = vsel %vm614_vm5, %v952_v58, %v953_v59  ;;  %v2765_v22 = vsel %vm614_vm5, %v953_v59, %v4366_v5  ;;  %v434_v59 = vmul.f32 %v2570_v25, %v2652_v2 }
  0xde   : > { %743 = vrot.lane.b32.xlu0 %v736_v11, %s2365_s4  ;;  %v2751_v11 = vstv %s2146_s24  ;;  %s2174_s24 = sld [smem:[#allocation3 + $0x2f]] }
  0xdf   : > { %336 = vrot.lane.b32.xlu1 %v324_v14, %s2365_s4  ;;  %v997_v14 = vrot.slane %v985_v62, 1  ;;  %v851_v19 = vmul.f32 %v2751_v11, %v2619_v43  ;;  %v853_v20 = vmul.f32 %v2751_v11, %v2525_v8 }
  0xe0   : > { %v2674_v15 = vpop.permute.xlu0 %338 }
  0xe1   : > { %v2777_v34 = vsel %vm614_vm5, %v997_v14, %v998_v23  ;;  %v865_v47 = vrot.slane %v851_v19, 1  ;;  %v866_v51 = vrot.slane %v853_v20, 1  ;;  %v465_v14 = vmul.f32 %v2581_v29, %v2650_v1 }
  0xe2   : > { %747 = vrot.lane.b32.xlu0 %v735_v9, %s2365_s4  ;;  %v826_v9 = vsel %vm614_vm5, %v821_v46, %v825_v55  ;;  %v2813_v19 = vstv %s2147_s29  ;;  %s2129_s29 = sld [smem:[#allocation3 + $0x20]] }
  0xe3   : > { %344 = vrot.lane.b32.xlu1 %v328_v18, %s2365_s4  ;;  %v2755_v18 = vmul.f32 %v2726_v54, %v2718_v50 }
  0xe4   : > { %v2686_v24 = vpop.permute.xlu0 %342 }
  0xe5   : > { %4392 = vst [vmem:[#allocation14_spill] sm:$0xff] %v2686_v24 }
  0xe6   : > { %784 = vrot.lane.b32.xlu0 %v777_v28, %s2365_s4  ;;  %v1030_v28 = vmul.f32 %v2739_v63, %v2706_v39 }
  0xe7   : > { %371 = vrot.lane.b32.xlu1 %v359_v27, %s2365_s4  ;;  %v4365_v27 = vrot.slane %v2755_v18, 1 }
  0xe8   : > { %v2701_v35 = vpop.permute.xlu0 %346  ;;  %v1042_v44 = vrot.slane %v1030_v28, 1 }
  0xea   : > { %788 = vrot.lane.b32.xlu0 %v781_v36, %s2365_s4  ;;  %v2781_v36 = vmul.f32 %v2739_v63, %v2718_v50 }
  0xeb   : > { %379 = vrot.lane.b32.xlu1 %v363_v38, %s2365_s4  ;;  %v2787_v38 = vsel %vm614_vm5, %v998_v23, %v4365_v27  ;;  %v898_v23 = vmul.f32 %v2813_v19, %v2525_v8  ;;  %v719_v27 = vmul.f32 %v2640_v57, %v2718_v50 }
  0xec   : > { %v2716_v49 = vpop.permute.xlu0 %373  ;;  %v4364_v53 = vrot.slane %v2781_v36, 1 }
  0xed   : > { %v733_v5 = vrot.slane %v719_v27, 1 }
  0xee   : > { %792 = vrot.lane.b32.xlu0 %v780_v30, %s2365_s4  ;;  %v1032_v30 = vmul.f32 %v2739_v63, %v2710_v42 }
  0xef   : > { %406 = vrot.lane.b32.xlu1 %v394_v52, %s2366_s15  ;;  %v855_v52 = vmul.f32 %v2751_v11, %v2630_v48 }
  0xf0   : > { %v2735_v61 = vpop.permute.xlu0 %377  ;;  %v1043_v46 = vrot.slane %v1032_v30, 1  ;;  %v469_v30 = vmul.f32 %v2581_v29, %v2652_v2 }
  0xf1   : > { %4393 = vst [vmem:[#allocation15_spill] sm:$0xff] %v2735_v61  ;;  %v870_v7 = vrot.slane %v855_v52, 1 }
  0xf2   : > { %829 = vrot.lane.b32.xlu0 %v822_v56, %s2366_s15  ;;  %v2796_v58 = vsel %vm614_vm5, %v1042_v44, %v1043_v46  ;;  %v2803_v62 = vsel %vm614_vm5, %v1043_v46, %v4364_v53  ;;  %v911_v44 = vrot.slane %v898_v23, 1  ;;  %v900_v46 = vmul.f32 %v2813_v19, %v2630_v48 }
  0xf3   : > { %414 = vrot.lane.b32.xlu1 %v398_v0, %s2366_s15  ;;  %v867_v0 = vsel %vm614_vm5, %v865_v47, %v866_v51  ;;  %v871_v20 = vsel %vm614_vm5, %v866_v51, %v870_v7  ;;  %v500_v51 = vmul.f32 %v2592_v33, %v2650_v1 }
  0xf4   : > { %v2767_v26 = vpop.permute.xlu0 %381 }
  0xf5   : > { %4394 = vst [vmem:[#allocation16_spill] sm:$0xff] %v2767_v26 }
  0xf6   : > { %833 = vrot.lane.b32.xlu0 %v826_v9, %s2366_s15 }
  0xf7   : > { %442 = vrot.lane.b32.xlu1 %v430_v32, %s2366_s15 }
  0xf8   : > { %v2793_v56 = vpop.permute.xlu0 %408 }
  0xfa   : > { %837 = vrot.lane.b32.xlu0 %v825_v55, %s2366_s15  ;;  %v896_v55 = vmul.f32 %v2813_v19, %v2619_v43 }
  0xfb   : > { %450 = vrot.lane.b32.xlu1 %v434_v59, %s2366_s15  ;;  %v915_v59 = vrot.slane %v900_v46, 1 }
  0xfc   : > { %v2808_v9 = vpop.permute.xlu0 %412  ;;  %v910_v32 = vrot.slane %v896_v55, 1  ;;  %v941_v55 = vmul.f32 %v2708_v40, %v2619_v43 }
  0xfd   : > { %4395 = vst [vmem:[#allocation17_spill] sm:$0xff] %v2808_v9  ;;  %v762_v9 = vmul.f32 %v2676_v16, %v2710_v42 }
  0xfe   : > { %874 = vrot.lane.b32.xlu0 %v867_v0, %s2366_s15  ;;  %v912_v52 = vsel %vm614_vm5, %v910_v32, %v911_v44  ;;  %v955_v32 = vrot.slane %v941_v55, 1  ;;  %v571_v55 = vmul.f32 %v2614_v41, %v2650_v1 }
  0xff   : > { %477 = vrot.lane.b32.xlu1 %v465_v14, %s2366_s15  ;;  %v504_v14 = vmul.f32 %v2592_v33, %v2652_v2 }
 0x100   : > { %v2821_v28 = vpop.permute.xlu0 %416 }
 0x101   : > { %4396 = vst [vmem:[#allocation18_spill] sm:$0xff] %v2821_v28 }
 0x102   : > { %878 = vrot.lane.b32.xlu0 %v871_v20, %s2366_s15  ;;  %v916_v20 = vsel %vm614_vm5, %v911_v44, %v915_v59  ;;  %v945_v44 = vmul.f32 %v2708_v40, %v2630_v48 }
 0x103   : > { %485 = vrot.lane.b32.xlu1 %v469_v30, %s2366_s15  ;;  %v536_v30 = vmul.f32 %v2603_v37, %v2650_v1  ;;  %v290_v1 = vmul.f32 %v2521_v6, %v2710_v42 }
 0x104   : > { %v2829_v47 = vpop.permute.xlu0 %444  ;;  %v960_v53 = vrot.slane %v945_v44, 1 }
 0x106   : > { %882 = vrot.lane.b32.xlu0 %v870_v7, %s2366_s15  ;;  %v943_v7 = vmul.f32 %v2708_v40, %v2525_v8 }
 0x107   : > { %512 = vrot.lane.b32.xlu1 %v500_v51, %s2367_s9 }
 0x108   : > { %v2836_v0 = vpop.permute.xlu0 %448  ;;  %v956_v46 = vrot.slane %v943_v7, 1  ;;  %v986_v7 = vmul.f32 %v2726_v54, %v2619_v43 }
 0x109   : > { %4397 = vst [vmem:[#allocation19_spill] sm:$0xff] %v2836_v0 }
 0x10a   : > { %919 = vrot.lane.b32.xlu0 %v912_v52, %s2366_s15  ;;  %v540_v52 = vmul.f32 %v2603_v37, %v2652_v2  ;;  %v961_v40 = vsel %vm614_vm5, %v956_v46, %v960_v53  ;;  %v1000_v44 = vrot.slane %v986_v7, 1 }
 0x10b   : > { %520 = vrot.lane.b32.xlu1 %v504_v14, %s2367_s9  ;;  %v957_v14 = vsel %vm614_vm5, %v955_v32, %v956_v46  ;;  %v575_v32 = vmul.f32 %v2614_v41, %v2652_v2 }
 0x10c   : > { %v2847_v23 = vpop.permute.xlu0 %452 }
 0x10d   : > { %4398 = vst [vmem:[#allocation20_spill] sm:$0xff] %v2847_v23 }
 0x10e   : > { %923 = vrot.lane.b32.xlu0 %v916_v20, %s2366_s15 }
 0x10f   : > { %548 = vrot.lane.b32.xlu1 %v536_v30, %s2367_s9 }
 0x110   : > { %v2855_v51 = vpop.permute.xlu0 %479 }
 0x112   : > { %927 = vrot.lane.b32.xlu0 %v915_v59, %s2366_s15  ;;  %v988_v59 = vmul.f32 %v2726_v54, %v2525_v8 }
 0x113   : > { %556 = vrot.lane.b32.xlu1 %v540_v52, %s2367_s9  ;;  %v990_v52 = vmul.f32 %v2726_v54, %v2630_v48  ;;  %v1031_v54 = vmul.f32 %v2739_v63, %v2619_v43  ;;  %v396_v43 = vmul.f32 %v2559_v21, %v2710_v42 }
 0x114   : > { %v2862_v20 = vpop.permute.xlu0 %483  ;;  %v1001_v46 = vrot.slane %v988_v59, 1  ;;  %v361_v59 = vmul.f32 %v2548_v17, %v2710_v42 }
 0x115   : > { %4399 = vst [vmem:[#allocation21_spill] sm:$0xff] %v2862_v20 }
 0x116   : > { %964 = vrot.lane.b32.xlu0 %v957_v14, %s2367_s9  ;;  %v1002_v2 = vsel %vm614_vm5, %v1000_v44, %v1001_v46  ;;  %v1035_v44 = vmul.f32 %v2739_v63, %v2630_v48  ;;  %v2919_v48 = vstv %s2154_s22  ;;  %s2127_s22 = sld [smem:[#allocation7 + $0x2]] }
 0x117   : > { %583 = vrot.lane.b32.xlu1 %v571_v55, %s2367_s9  ;;  %v1005_v55 = vrot.slane %v990_v52, 1 }
 0x118   : > { %v2873_v30 = vpop.permute.xlu0 %487  ;;  %v1050_v52 = vrot.slane %v1035_v44, 1 }
 0x119   : > { %4400 = vst [vmem:[#allocation22_spill] sm:$0xff] %v2873_v30  ;;  %v1006_v6 = vsel %vm614_vm5, %v1001_v46, %v1005_v55 }
 0x11a   : > { %968 = vrot.lane.b32.xlu0 %v961_v40, %s2367_s9 }
 0x11b   : > { %591 = vrot.lane.b32.xlu1 %v575_v32, %s2367_s9  ;;  %v326_v32 = vmul.f32 %v2537_v13, %v2710_v42  ;;  %v1045_v13 = vrot.slane %v1031_v54, 1 }
 0x11c   : > { %v2883_v14 = vpop.permute.xlu0 %514 }
 0x11e   : > { %972 = vrot.lane.b32.xlu0 %v960_v53, %s2367_s9  ;;  %v1033_v53 = vmul.f32 %v2739_v63, %v2525_v8  ;;  %v2923_v63 = vld [vmem:[#allocation2 + $0x8] sm:$0xfc] }
 0x11f   : > { %304 = vrot.lane.b32.xlu1 %v290_v1, %s2365_s4  ;;  %v1140_v54 = vmul.f32 %v2919_v48, %v2923_v63 }
 0x120   : > { %v2888_v40 = vpop.permute.xlu0 %518  ;;  %v1046_v1 = vrot.slane %v1033_v53, 1 }
 0x121   : > { %4401 = vst [vmem:[#allocation23_spill] sm:$0xff] %v2888_v40  ;;  %v1154_v53 = vrot.slane %v1140_v54, 2 }
 0x122   : > { %1009 = vrot.lane.b32.xlu0 %v1002_v2, %s2367_s9  ;;  %v1047_v17 = vsel %vm614_vm5, %v1045_v13, %v1046_v1  ;;  %v1051_v21 = vsel %vm614_vm5, %v1046_v1, %v1050_v52  ;;  %v2935_v13 = vld [vmem:[#allocation2 + $0x28] sm:$0x1f] }
 0x123   : > { %340 = vrot.lane.b32.xlu1 %v326_v32, %s2365_s4  ;;  %v432_v32 = vmul.f32 %v2570_v25, %v2710_v42  ;;  %v467_v25 = vmul.f32 %v2581_v29, %v2710_v42  ;;  %v1144_v44 = vmul.f32 %v2919_v48, %v2935_v13 }
 0x124   : > { %v2899_v7 = vpop.permute.xlu0 %522 }
 0x125   : > { %4402 = vst [vmem:[#allocation24_spill] sm:$0xff] %v2899_v7 }
 0x126   : > { %1013 = vrot.lane.b32.xlu0 %v1006_v6, %s2367_s9 }
 0x127   : > { %375 = vrot.lane.b32.xlu1 %v361_v59, %s2365_s4 }
 0x128   : > { %v2907_v46 = vpop.permute.xlu0 %550 }
 0x12a   : > { %1017 = vrot.lane.b32.xlu0 %v1005_v55, %s2367_s9  ;;  %v1142_v55 = vmul.f32 %v2919_v48, %v2525_v8 }
 0x12b   : > { %410 = vrot.lane.b32.xlu1 %v396_v43, %s2366_s15  ;;  %v502_v43 = vmul.f32 %v2592_v33, %v2710_v42 }
 0x12c   : > { %v2914_v2 = vpop.permute.xlu0 %554  ;;  %v1155_v59 = vrot.slane %v1142_v55, 2  ;;  %v2951_v55 = vstv %s2155_s30  ;;  %s2141_s30 = sld [smem:[#allocation3 + $0x24]] }
 0x12d   : > { %4403 = vst [vmem:[#allocation25_spill] sm:$0xff] %v2914_v2  ;;  %v1187_v54 = vmul.f32 %v2951_v55, %v2525_v8  ;;  %v2983_v2 = vstv %s2156_s21  ;;  %s3595_s21 = sld [smem:[#allocation3]] }
 0x12e   : > { %1054 = vrot.lane.b32.xlu0 %v1047_v17, %s2367_s9  ;;  %v1156_v29 = vsel %vm1083_vm7, %v1154_v53, %v1155_v59  ;;  %v1159_v17 = vrot.slane %v1144_v44, 2  ;;  %v573_v53 = vmul.f32 %v2614_v41, %v2710_v42  ;;  %v672_v41 = vmul.f32 %v2624_v45, %v2710_v42 }
 0x12f   : > { %446 = vrot.lane.b32.xlu1 %v432_v32, %s2366_s15  ;;  %v1200_v44 = vrot.slane %v1187_v54, 2  ;;  %v670_v54 = vmul.f32 %v2624_v45, %v2706_v39  ;;  %v1230_v0 = vmul.f32 %v2983_v2, %v2923_v63 }
 0x130   : > { %v2927_v6 = vpop.permute.xlu0 %558  ;;  %v1160_v33 = vsel %vm1083_vm7, %v1155_v59, %v1159_v17 }
 0x131   : > { %4404 = vst [vmem:[#allocation26_spill] sm:$0xff] %v2927_v6 }
 0x132   : > { %1058 = vrot.lane.b32.xlu0 %v1051_v21, %s2367_s9  ;;  %v538_v21 = vmul.f32 %v2603_v37, %v2710_v42  ;;  %v674_v37 = vmul.f32 %v2624_v45, %v2718_v50 }
 0x133   : > { %481 = vrot.lane.b32.xlu1 %v467_v25, %s2366_s15 }
 0x134   : > { %v2937_v1 = vpop.permute.xlu0 %585 }
 0x136   : > { %1062 = vrot.lane.b32.xlu0 %v1050_v52, %s2367_s9  ;;  %v1185_v52 = vmul.f32 %v2951_v55, %v2923_v63 }
 0x137   : > { %516 = vrot.lane.b32.xlu1 %v502_v43, %s2367_s9  ;;  %v1189_v43 = vmul.f32 %v2951_v55, %v2935_v13 }
 0x138   : > { %v2946_v32 = vpop.permute.xlu0 %589  ;;  %v1199_v59 = vrot.slane %v1185_v52, 2 }
 0x139   : > { %4405 = vst [vmem:[#allocation27_spill] sm:$0xff] %v2946_v32  ;;  %v1204_v52 = vrot.slane %v1189_v43, 2  ;;  %v682_v43 = vrot.slane %v670_v54, 1  ;;  %v715_v54 = vmul.f32 %v2640_v57, %v2706_v39 }
 0x13a   : > { %1163 = vrot.lane.b32.xlu0 %v1156_v29, %s2365_s4 }
 0x13b   : > { %552 = vrot.lane.b32.xlu1 %v538_v21, %s2367_s9  ;;  %v688_v21 = vrot.slane %v674_v37, 1  ;;  %v683_v37 = vrot.slane %v672_v41, 1  ;;  %v717_v41 = vmul.f32 %v2640_v57, %v2710_v42 }
 0x13c   : > { %v2959_v25 = vpop.permute.xlu0 %593 }
 0x13d   : > { %4406 = vst [vmem:[#allocation28_spill] sm:$0xff] %v2959_v25  ;;  %v684_v27 = vsel %vm614_vm5, %v682_v43, %v683_v37  ;;  %v689_v43 = vsel %vm614_vm5, %v683_v37, %v688_v21  ;;  %v728_v40 = vrot.slane %v717_v41, 1  ;;  %v760_v41 = vmul.f32 %v2676_v16, %v2706_v39 }
 0x13e   : > { %1167 = vrot.lane.b32.xlu0 %v1160_v33, %s2365_s4  ;;  %v1201_v33 = vsel %vm1083_vm7, %v1199_v59, %v1200_v44  ;;  %v1232_v59 = vmul.f32 %v2983_v2, %v2525_v8 }
 0x13f   : > { %587 = vrot.lane.b32.xlu1 %v573_v53, %s2367_s9 }
 0x140   : > { %v2969_v29 = vpop.permute.xlu0 %694 }
 0x142   : > { %1171 = vrot.lane.b32.xlu0 %v1159_v17, %s2365_s4  ;;  %v1205_v17 = vsel %vm1083_vm7, %v1200_v44, %v1204_v52  ;;  %v1244_v44 = vrot.slane %v1230_v0, 2 }
 0x143   : > { %700 = vrot.lane.b32.xlu1 %v688_v21, %s2365_s4  ;;  %v3020_v21 = vstv %s2157_s5  ;;  %s3611_s5 = sld [smem:[#allocation7]] }
 0x144   : > { %v2980_v53 = vpop.permute.xlu0 %698  ;;  %v1277_v37 = vmul.f32 %v3020_v21, %v2525_v8 }
 0x145   : > { %4407 = vst [vmem:[#allocation29_spill] sm:$0xff] %v2980_v53  ;;  %v1234_v53 = vmul.f32 %v2983_v2, %v2935_v13 }
 0x146   : > { %1208 = vrot.lane.b32.xlu0 %v1201_v33, %s2365_s4  ;;  %v1245_v33 = vrot.slane %v1232_v59, 2  ;;  %v727_v59 = vrot.slane %v715_v54, 1 }
 0x147   : > { %745 = vrot.lane.b32.xlu1 %v733_v5, %s2365_s4 }
 0x148   : > { %v2991_v45 = vpop.permute.xlu0 %702  ;;  %v1246_v0 = vsel %vm1083_vm7, %v1244_v44, %v1245_v33  ;;  %v729_v57 = vsel %vm614_vm5, %v727_v59, %v728_v40  ;;  %v764_v59 = vmul.f32 %v2676_v16, %v2718_v50 }
 0x149   : > { %4408 = vst [vmem:[#allocation30_spill] sm:$0xff] %v2991_v45  ;;  %v2993_v24 = vpop.permute.xlu1 %300 }
 0x14a   : > { %1212 = vrot.lane.b32.xlu0 %v1205_v17, %s2365_s4  ;;  %v1249_v17 = vrot.slane %v1234_v53, 2  ;;  %v1275_v53 = vmul.f32 %v3020_v21, %v2923_v63 }
 0x14b   : > { %692 = vrot.lane.b32.xlu1 %v684_v27, %s2365_s4 }
 0x14c   : > { %v3004_v45 = vpop.permute.xlu0 %739 }
 0x14d   : > { %4409 = vst [vmem:[#allocation31_spill] sm:$0xff] %v3004_v45  ;;  %v3006_v7 = vpop.permute.xlu1 %308 }
 0x14e   : > { %4410 = vst [vmem:[#allocation32_spill] sm:$0xff] %v3006_v7  ;;  %1216 = vrot.lane.b32.xlu0 %v1204_v52, %s2365_s4  ;;  %v1250_v52 = vsel %vm1083_vm7, %v1245_v33, %v1249_v17  ;;  %v1289_v33 = vrot.slane %v1275_v53, 2  ;;  %v772_v7 = vrot.slane %v760_v41, 1  ;;  %v807_v41 = vmul.f32 %v2694_v31, %v2710_v42 }
 0x14f   : > { %696 = vrot.lane.b32.xlu1 %v689_v43, %s2365_s4  ;;  %v734_v43 = vsel %vm614_vm5, %v728_v40, %v733_v5 }
 0x150   : > { %v3012_v27 = vpop.permute.xlu0 %743 }
 0x151   : > { %4411 = vst [vmem:[#allocation33_spill] sm:$0xff] %v3012_v27  ;;  %v3014_v28 = vpop.permute.xlu1 %336  ;;  %v1279_v27 = vmul.f32 %v3020_v21, %v2935_v13 }
 0x152   : > { %1253 = vrot.lane.b32.xlu0 %v1246_v0, %s2365_s4  ;;  %v773_v0 = vrot.slane %v762_v9, 1  ;;  %v778_v9 = vrot.slane %v764_v59, 1 }
 0x153   : > { %737 = vrot.lane.b32.xlu1 %v729_v57, %s2365_s4  ;;  %v1290_v57 = vrot.slane %v1277_v37, 2  ;;  %v1294_v40 = vrot.slane %v1279_v27, 2 }
 0x154   : > { %v3030_v44 = vpop.permute.xlu0 %747  ;;  %v774_v5 = vsel %vm614_vm5, %v772_v7, %v773_v0  ;;  %v779_v37 = vsel %vm614_vm5, %v773_v0, %v778_v9  ;;  %v3057_v7 = vstv %s2158_s27  ;;  %v805_v0 = vmul.f32 %v2694_v31, %v2706_v39  ;;  %s3613_s27 = sld [smem:[#allocation7 + $0x1]] }
 0x155   : > { %4412 = vst [vmem:[#allocation34_spill] sm:$0xff] %v3030_v44  ;;  %v3032_v54 = vpop.permute.xlu1 %344  ;;  %v1291_v16 = vsel %vm1083_vm7, %v1289_v33, %v1290_v57  ;;  %v1320_v27 = vmul.f32 %v3057_v7, %v2923_v63 }
 0x156   : > { %1257 = vrot.lane.b32.xlu0 %v1250_v52, %s2365_s4  ;;  %v817_v25 = vrot.slane %v805_v0, 1  ;;  %v852_v0 = vmul.f32 %v2751_v11, %v2710_v42 }
 0x157   : > { %741 = vrot.lane.b32.xlu1 %v734_v43, %s2365_s4  ;;  %v1322_v43 = vmul.f32 %v3057_v7, %v2525_v8 }
 0x158   : > { %v3041_v12 = vpop.permute.xlu0 %784 }
 0x159   : > { %v3043_v10 = vpop.permute.xlu1 %371 }
 0x15a   : > { %1261 = vrot.lane.b32.xlu0 %v1249_v17, %s2365_s4  ;;  %v1295_v17 = vsel %vm1083_vm7, %v1290_v57, %v1294_v40  ;;  %v1334_v57 = vrot.slane %v1320_v27, 2 }
 0x15b   : > { %782 = vrot.lane.b32.xlu1 %v774_v5, %s2365_s4  ;;  %v818_v5 = vrot.slane %v807_v41, 1 }
 0x15c   : > { %v3049_v52 = vpop.permute.xlu0 %788 }
 0x15d   : > { %4413 = vst [vmem:[#allocation35_spill] sm:$0xff] %v3049_v52  ;;  %v3051_v53 = vpop.permute.xlu1 %379  ;;  %v1324_v52 = vmul.f32 %v3057_v7, %v2935_v13  ;;  %v819_v41 = vsel %vm614_vm5, %v817_v25, %v818_v5  ;;  %v3093_v25 = vstv %s2159_s6  ;;  %s3616_s6 = sld [smem:[#allocation3 + $0x10]] }
 0x15e   : > { %4414 = vst [vmem:[#allocation36_spill] sm:$0xff] %v3051_v53  ;;  %1298 = vrot.lane.b32.xlu0 %v1291_v16, %s2366_s15  ;;  %v809_v16 = vmul.f32 %v2694_v31, %v2718_v50 }
 0x15f   : > { %786 = vrot.lane.b32.xlu1 %v779_v37, %s2365_s4  ;;  %v1335_v37 = vrot.slane %v1322_v43, 2 }
 0x160   : > { %v3067_v59 = vpop.permute.xlu0 %792  ;;  %v823_v32 = vrot.slane %v809_v16, 1  ;;  %v1367_v16 = vmul.f32 %v3093_v25, %v2525_v8 }
 0x161   : > { %4415 = vst [vmem:[#allocation37_spill] sm:$0xff] %v3067_v59  ;;  %v3069_v33 = vpop.permute.xlu1 %406  ;;  %v1336_v31 = vsel %vm1083_vm7, %v1334_v57, %v1335_v37 }
 0x162   : > { %1302 = vrot.lane.b32.xlu0 %v1295_v17, %s2366_s15  ;;  %v824_v43 = vsel %vm614_vm5, %v818_v5, %v823_v32  ;;  %v850_v5 = vmul.f32 %v2751_v11, %v2706_v39 }
 0x163   : > { %790 = vrot.lane.b32.xlu1 %v778_v9, %s2365_s4  ;;  %v1339_v9 = vrot.slane %v1324_v52, 2  ;;  %v1365_v52 = vmul.f32 %v3093_v25, %v2923_v63 }
 0x164   : > { %v3077_v30 = vpop.permute.xlu0 %829  ;;  %v862_v53 = vrot.slane %v850_v5, 1  ;;  %v897_v5 = vmul.f32 %v2813_v19, %v2710_v42 }
 0x165   : > { %v3079_v59 = vpop.permute.xlu1 %414 }
 0x166   : > { %4416 = vst [vmem:[#allocation38_spill] sm:$0xff] %v3079_v59  ;;  %1306 = vrot.lane.b32.xlu0 %v1294_v40, %s2366_s15  ;;  %v1340_v40 = vsel %vm1083_vm7, %v1335_v37, %v1339_v9  ;;  %v1379_v37 = vrot.slane %v1365_v52, 2  ;;  %v1369_v59 = vmul.f32 %v3093_v25, %v2935_v13 }
 0x167   : > { %827 = vrot.lane.b32.xlu1 %v819_v41, %s2366_s15 }
 0x168   : > { %v3085_v17 = vpop.permute.xlu0 %833 }
 0x169   : > { %4417 = vst [vmem:[#allocation39_spill] sm:$0xff] %v3085_v17  ;;  %v3087_v27 = vpop.permute.xlu1 %442  ;;  %v854_v17 = vmul.f32 %v2751_v11, %v2718_v50 }
 0x16a   : > { %1343 = vrot.lane.b32.xlu0 %v1336_v31, %s2366_s15  ;;  %v863_v31 = vrot.slane %v852_v0, 1 }
 0x16b   : > { %831 = vrot.lane.b32.xlu1 %v824_v43, %s2366_s15  ;;  %v1380_v43 = vrot.slane %v1367_v16, 2  ;;  %v868_v44 = vrot.slane %v854_v17, 1 }
 0x16c   : > { %v3103_v57 = vpop.permute.xlu0 %837  ;;  %v864_v0 = vsel %vm614_vm5, %v862_v53, %v863_v31  ;;  %v3129_v53 = vstv %s2160_s25  ;;  %s3626_s25 = sld [smem:[#allocation3 + $0x4]] }
 0x16d   : > { %4418 = vst [vmem:[#allocation40_spill] sm:$0xff] %v3103_v57  ;;  %v3105_v41 = vpop.permute.xlu1 %450  ;;  %v1381_v11 = vsel %vm1083_vm7, %v1379_v37, %v1380_v43  ;;  %v869_v16 = vsel %vm614_vm5, %v863_v31, %v868_v44  ;;  %v1412_v17 = vmul.f32 %v3129_v53, %v2525_v8  ;;  %v895_v31 = vmul.f32 %v2813_v19, %v2706_v39 }
 0x16e   : > { %4419 = vst [vmem:[#allocation41_spill] sm:$0xff] %v3105_v41  ;;  %1347 = vrot.lane.b32.xlu0 %v1340_v40, %s2366_s15 }
 0x16f   : > { %835 = vrot.lane.b32.xlu1 %v823_v32, %s2366_s15  ;;  %v1384_v32 = vrot.slane %v1369_v59, 2  ;;  %v1410_v59 = vmul.f32 %v3129_v53, %v2923_v63  ;;  %v907_v20 = vrot.slane %v895_v31, 1 }
 0x170   : > { %v3113_v26 = vpop.permute.xlu0 %874 }
 0x171   : > { %4420 = vst [vmem:[#allocation42_spill] sm:$0xff] %v3113_v26  ;;  %v3115_v57 = vpop.permute.xlu1 %477 }
 0x172   : > { %1351 = vrot.lane.b32.xlu0 %v1339_v9, %s2366_s15  ;;  %v1385_v9 = vsel %vm1083_vm7, %v1380_v43, %v1384_v32  ;;  %v1424_v43 = vrot.slane %v1410_v59, 2 }
 0x173   : > { %872 = vrot.lane.b32.xlu1 %v864_v0, %s2366_s15 }
 0x174   : > { %v3121_v40 = vpop.permute.xlu0 %878 }
 0x175   : > { %4421 = vst [vmem:[#allocation43_spill] sm:$0xff] %v3121_v40  ;;  %v3123_v52 = vpop.permute.xlu1 %485  ;;  %v899_v40 = vmul.f32 %v2813_v19, %v2718_v50 }
 0x176   : > { %4422 = vst [vmem:[#allocation44_spill] sm:$0xff] %v3123_v52  ;;  %1388 = vrot.lane.b32.xlu0 %v1381_v11, %s2366_s15  ;;  %v908_v11 = vrot.slane %v897_v5, 1  ;;  %v1414_v52 = vmul.f32 %v3129_v53, %v2935_v13 }
 0x177   : > { %876 = vrot.lane.b32.xlu1 %v869_v16, %s2366_s15  ;;  %v1425_v16 = vrot.slane %v1412_v17, 2  ;;  %v913_v61 = vrot.slane %v899_v40, 1  ;;  %v3163_v17 = vstv %s2161_s7  ;;  %s3634_s7 = sld [smem:[#allocation3 + $0x28]] }
 0x178   : > { %v3139_v37 = vpop.permute.xlu0 %882  ;;  %v909_v5 = vsel %vm614_vm5, %v907_v20, %v908_v11  ;;  %v1429_v19 = vrot.slane %v1414_v52, 2  ;;  %v1457_v40 = vmul.f32 %v3163_v17, %v2525_v8 }
 0x179   : > { %4423 = vst [vmem:[#allocation45_spill] sm:$0xff] %v3139_v37  ;;  %v3141_v0 = vpop.permute.xlu1 %512  ;;  %v1426_v50 = vsel %vm1083_vm7, %v1424_v43, %v1425_v16  ;;  %v914_v59 = vsel %vm614_vm5, %v908_v11, %v913_v61 }
 0x17a   : > { %1392 = vrot.lane.b32.xlu0 %v1385_v9, %s2366_s15  ;;  %v1430_v20 = vsel %vm1083_vm7, %v1425_v16, %v1429_v19  ;;  %v1470_v43 = vrot.slane %v1457_v40, 2  ;;  %v1459_v16 = vmul.f32 %v3163_v17, %v2935_v13 }
 0x17b   : > { %880 = vrot.lane.b32.xlu1 %v868_v44, %s2366_s15 }
 0x17c   : > { %v3149_v39 = vpop.permute.xlu0 %919 }
 0x17d   : > { %v3151_v37 = vpop.permute.xlu1 %520 }
 0x17e   : > { %4424 = vst [vmem:[#allocation46_spill] sm:$0xff] %v3151_v37  ;;  %1396 = vrot.lane.b32.xlu0 %v1384_v32, %s2366_s15  ;;  %v1455_v32 = vmul.f32 %v3163_v17, %v2923_v63 }
 0x17f   : > { %917 = vrot.lane.b32.xlu1 %v909_v5, %s2366_s15 }
 0x180   : > { %v3157_v44 = vpop.permute.xlu0 %923  ;;  %v1469_v11 = vrot.slane %v1455_v32, 2  ;;  %v3192_v32 = vstv %s2162_s8  ;;  %s3666_s8 = sld [smem:[#allocation3 + $0x14]] }
 0x181   : > { %4425 = vst [vmem:[#allocation47_spill] sm:$0xff] %v3157_v44  ;;  %v3159_v9 = vpop.permute.xlu1 %548 }
 0x182   : > { %1433 = vrot.lane.b32.xlu0 %v1426_v50, %s2367_s9  ;;  %v1471_v8 = vsel %vm1083_vm7, %v1469_v11, %v1470_v43 }
 0x183   : > { %921 = vrot.lane.b32.xlu1 %v914_v59, %s2366_s15  ;;  %v1474_v59 = vrot.slane %v1459_v16, 2 }
 0x184   : > { %v3171_v52 = vpop.permute.xlu0 %927 }
 0x185   : > { %4426 = vst [vmem:[#allocation48_spill] sm:$0xff] %v3171_v52  ;;  %v3173_v31 = vpop.permute.xlu1 %556  ;;  %v1475_v40 = vsel %vm1083_vm7, %v1470_v43, %v1474_v59 }
 0x186   : > { %4427 = vst [vmem:[#allocation49_spill] sm:$0xff] %v3173_v31  ;;  %1437 = vrot.lane.b32.xlu0 %v1430_v20, %s2367_s9 }
 0x187   : > { %925 = vrot.lane.b32.xlu1 %v913_v61, %s2366_s15 }
 0x188   : > { %v3179_v5 = vpop.permute.xlu0 %964 }
 0x189   : > { %v3181_v50 = vpop.permute.xlu1 %583 }
 0x18a   : > { %1441 = vrot.lane.b32.xlu0 %v1429_v19, %s2367_s9  ;;  %v1500_v19 = vmul.f32 %v3192_v32, %v2923_v63  ;;  %v1504_v63 = vmul.f32 %v3192_v32, %v2935_v13 }
 0x18b   : > { %962 = vrot.lane.b32.xlu1 %v2744_v4, %s2367_s9  ;;  %v3199_v4 = vld [vmem:[#allocation2 + $0x18] sm:$0xff] }
 0x18c   : > { %v3187_v20 = vpop.permute.xlu0 %968  ;;  %v1502_v11 = vmul.f32 %v3199_v4, %v3192_v32  ;;  %v1514_v43 = vrot.slane %v1500_v19, 2  ;;  %v3226_v19 = vstv %s2166_s28  ;;  %s3668_s28 = sld [smem:[#allocation3 + $0x8]] }
 0x18d   : > { %4428 = vst [vmem:[#allocation50_spill] sm:$0xff] %v3187_v20  ;;  %v3189_v61 = vpop.permute.xlu1 %591 }
 0x18e   : > { %4429 = vst [vmem:[#allocation51_spill] sm:$0xff] %v3189_v61  ;;  %1478 = vrot.lane.b32.xlu0 %v1471_v8, %s2367_s9  ;;  %v1515_v8 = vrot.slane %v1502_v11, 2 }
 0x18f   : > { %966 = vrot.lane.b32.xlu1 %v2765_v22, %s2367_s9  ;;  %v4432_v22 = vrot.slane %v2733_v60, 1 }
 0x190   : > { %v3203_v16 = vpop.permute.xlu0 %972 }
 0x191   : > { %4430 = vst [vmem:[#allocation52_spill] sm:$0xff] %v3203_v16  ;;  %v3205_v20 = vpop.permute.xlu1 %304  ;;  %v1519_v16 = vrot.slane %v1504_v63, 2 }
 0x192   : > { %4431 = vst [vmem:[#allocation53_spill] sm:$0xff] %v3205_v20  ;;  %1482 = vrot.lane.b32.xlu0 %v1475_v40, %s2367_s9  ;;  %v1516_v40 = vsel %vm1083_vm7, %v1514_v43, %v1515_v8 }
 0x193   : > { %970 = vrot.lane.b32.xlu1 %v4432_v22, %s2367_s9  ;;  %v1520_v13 = vsel %vm1083_vm7, %v1515_v8, %v1519_v16 }
 0x194   : > { %v3213_v52 = vpop.permute.xlu0 %1009 }
 0x195   : > { %4433 = vst [vmem:[#allocation54_spill] sm:$0xff] %v3213_v52  ;;  %v3215_v37 = vpop.permute.xlu1 %340 }
 0x196   : > { %4434 = vst [vmem:[#allocation55_spill] sm:$0xff] %v3215_v37  ;;  %1486 = vrot.lane.b32.xlu0 %v1474_v59, %s2367_s9  ;;  %v3231_v59 = vld [vmem:[#allocation2 + $0x8] sm:$0xf8] }
 0x197   : > { %1007 = vrot.lane.b32.xlu1 %v2777_v34, %s2367_s9  ;;  %v1611_v34 = vmul.f32 %v3199_v4, %v3226_v19  ;;  %v1609_v11 = vmul.f32 %v3226_v19, %v3231_v59 }
 0x198   : > { %v3221_v44 = vpop.permute.xlu0 %1013 }
 0x199   : > { %4435 = vst [vmem:[#allocation56_spill] sm:$0xff] %v3221_v44  ;;  %v3223_v60 = vpop.permute.xlu1 %375  ;;  %v1623_v8 = vrot.slane %v1609_v11, 3  ;;  %v1624_v63 = vrot.slane %v1611_v34, 3  ;;  %v3259_v34 = vld [vmem:[#allocation2] sm:$0xfc] }
 0x19a   : > { %4436 = vst [vmem:[#allocation57_spill] sm:$0xff] %v3223_v60  ;;  %1523 = vrot.lane.b32.xlu0 %v1516_v40, %s2367_s9  ;;  %v3245_v40 = vld [vmem:[#allocation2 + $0x28] sm:$0x3f]  ;;  %v1139_v20 = vmul.f32 %v2919_v48, %v3259_v34 }
 0x19b   : > { %1011 = vrot.lane.b32.xlu1 %v2787_v38, %s2367_s9  ;;  %v4439_v38 = vrot.slane %v2755_v18, 1  ;;  %v1613_v44 = vmul.f32 %v3226_v19, %v3245_v40  ;;  %v1625_v18 = vsel %vm1552_vm8, %v1623_v8, %v1624_v63 }
 0x19c   : > { %v3239_v43 = vpop.permute.xlu0 %1017  ;;  %v1151_v26 = vrot.slane %v1139_v20, 2  ;;  %v1186_v20 = vmul.f32 %v2951_v55, %v2710_v42 }
 0x19d   : > { %v3237_v22 = vpop.permute.xlu1 %410  ;;  %4438 = vst [vmem:[#allocation59_spill] sm:$0xff] %v3239_v43 }
 0x19e   : > { %4437 = vst [vmem:[#allocation58_spill] sm:$0xff] %v3237_v22  ;;  %1527 = vrot.lane.b32.xlu0 %v1520_v13, %s2367_s9  ;;  %v1141_v22 = vmul.f32 %v2919_v48, %v2710_v42 }
 0x19f   : > { %1015 = vrot.lane.b32.xlu1 %v4439_v38, %s2367_s9  ;;  %v1628_v38 = vrot.slane %v1613_v44, 3 }
 0x1a0   : > { %v3254_v13 = vpop.permute.xlu0 %1054  ;;  %v1152_v43 = vrot.slane %v1141_v22, 2 }
 0x1a1   : > { %v3249_v37 = vpop.permute.xlu1 %446 }
 0x1a2   : > { %4440 = vst [vmem:[#allocation60_spill] sm:$0xff] %v3249_v37  ;;  %1531 = vrot.lane.b32.xlu0 %v1519_v16, %s2367_s9  ;;  %v3264_v37 = vstv %s2167_s10  ;;  %v1629_v16 = vsel %vm1552_vm8, %v1624_v63, %v1628_v38  ;;  %v4444_v63 = vrot.slane %v2781_v36, 1  ;;  %v1153_v22 = vsel %vm1083_vm7, %v1151_v26, %v1152_v43  ;;  %s3681_s10 = sld [smem:[#allocation3 + $0x18]] }
 0x1a3   : > { %1052 = vrot.lane.b32.xlu1 %v2796_v58, %s2367_s9  ;;  %v3268_v58 = vld [vmem:[#allocation2 + $0x20] sm:$0x1f]  ;;  %v1654_v44 = vmul.f32 %v3264_v37, %v3231_v59  ;;  %v1656_v8 = vmul.f32 %v3199_v4, %v3264_v37  ;;  %v1658_v52 = vmul.f32 %v3264_v37, %v3245_v40  ;;  %v3303_v26 = vstv %s2168_s11  ;;  %s2184_s11 = smul.u32 72, %s4619_s16 }
 0x1a5   : > { %v3257_v11 = vpop.permute.xlu1 %481  ;;  %v1669_v60 = vrot.slane %v1656_v8, 3 }
 0x1a6   : > { %4441 = vst [vmem:[#allocation61_spill] sm:$0xff] %v3257_v11  ;;  %1632 = vrot.lane.b32.xlu0 %v1625_v18, %s2365_s4  ;;  %v3279_v18 = vpop.permute.xlu0 %1058  ;;  %v1668_v11 = vrot.slane %v1654_v44, 3 }
 0x1a7   : > { %1056 = vrot.lane.b32.xlu1 %v2803_v62, %s2367_s9  ;;  %4443 = vst [vmem:[#allocation63_spill] sm:$0xff] %v3279_v18  ;;  %v1143_v62 = vmul.f32 %v2919_v48, %v3268_v58 }
 0x1a8   : > { %v1670_v36 = vsel %vm1552_vm8, %v1668_v11, %v1669_v60 }
 0x1a9   : > { %v3277_v61 = vpop.permute.xlu1 %516  ;;  %v1157_v18 = vrot.slane %v1143_v62, 2  ;;  %v1699_v62 = vmul.f32 %v3303_v26, %v3231_v59 }
 0x1aa   : > { %4442 = vst [vmem:[#allocation62_spill] sm:$0xff] %v3277_v61  ;;  %1636 = vrot.lane.b32.xlu0 %v1629_v16, %s2365_s4  ;;  %v3294_v48 = vpop.permute.xlu0 %1062  ;;  %v1673_v16 = vrot.slane %v1658_v52, 3  ;;  %v1701_v52 = vmul.f32 %v3199_v4, %v3303_v26 }
 0x1ab   : > { %1060 = vrot.lane.b32.xlu1 %v4444_v63, %s2367_s9  ;;  %4446 = vst [vmem:[#allocation65_spill] sm:$0xff] %v3294_v48  ;;  %v1158_v8 = vsel %vm1083_vm7, %v1152_v43, %v1157_v18  ;;  %v1184_v43 = vmul.f32 %v2951_v55, %v3259_v34 }
 0x1ad   : > { %v3289_v61 = vpop.permute.xlu1 %552  ;;  %v1196_v48 = vrot.slane %v1184_v43, 2 }
 0x1ae   : > { %4445 = vst [vmem:[#allocation64_spill] sm:$0xff] %v3289_v61  ;;  %1640 = vrot.lane.b32.xlu0 %v1628_v38, %s2365_s4  ;;  %v1674_v38 = vsel %vm1552_vm8, %v1669_v60, %v1673_v16  ;;  %v3315_v63 = vpop.permute.xlu0 %1163  ;;  %v1713_v60 = vrot.slane %v1699_v62, 3  ;;  %v1703_v61 = vmul.f32 %v3303_v26, %v3245_v40 }
 0x1af   : > { %1161 = vrot.lane.b32.xlu1 %v1153_v22, %s2365_s4  ;;  %v1197_v22 = vrot.slane %v1186_v20, 2 }
 0x1b1   : > { %v3297_v44 = vpop.permute.xlu1 %587 }
 0x1b2   : > { %4447 = vst [vmem:[#allocation66_spill] sm:$0xff] %v3297_v44  ;;  %1677 = vrot.lane.b32.xlu0 %v1670_v36, %s2365_s4  ;;  %v1188_v36 = vmul.f32 %v2951_v55, %v3268_v58  ;;  %v3328_v55 = vpop.permute.xlu0 %1167 }
 0x1b3   : > { %1165 = vrot.lane.b32.xlu1 %v1158_v8, %s2365_s4  ;;  %v1714_v8 = vrot.slane %v1701_v52, 3  ;;  %4450 = vst [vmem:[#allocation69_spill] sm:$0xff] %v3328_v55  ;;  %v1231_v52 = vmul.f32 %v2983_v2, %v2710_v42 }
 0x1b4   : > { %v1202_v31 = vrot.slane %v1188_v36, 2 }
 0x1b5   : > { %v3313_v11 = vpop.permute.xlu1 %700  ;;  %v1715_v20 = vsel %vm1552_vm8, %v1713_v60, %v1714_v8  ;;  %v1242_v60 = vrot.slane %v1231_v52, 2 }
 0x1b6   : > { %4448 = vst [vmem:[#allocation67_spill] sm:$0xff] %v3313_v11  ;;  %1681 = vrot.lane.b32.xlu0 %v1674_v38, %s2365_s4  ;;  %v1198_v11 = vsel %vm1083_vm7, %v1196_v48, %v1197_v22  ;;  %v1203_v62 = vsel %vm1083_vm7, %v1197_v22, %v1202_v31  ;;  %v3337_v48 = vstv %s2169_s12  ;;  %v3349_v36 = vpop.permute.xlu0 %1171 }
 0x1b7   : > { %1169 = vrot.lane.b32.xlu1 %v1157_v18, %s2365_s4  ;;  %v1718_v18 = vrot.slane %v1703_v61, 3  ;;  %v1744_v43 = vmul.f32 %v3337_v48, %v3231_v59  ;;  %v1746_v61 = vmul.f32 %v3199_v4, %v3337_v48  ;;  %4452 = vst [vmem:[#allocation71_spill] sm:$0xff] %v3349_v36  ;;  %v1748_v55 = vmul.f32 %v3337_v48, %v3245_v40 }
 0x1b9   : > { %v3323_v44 = vpop.permute.xlu1 %745 }
 0x1ba   : > { %4449 = vst [vmem:[#allocation68_spill] sm:$0xff] %v3323_v44  ;;  %1685 = vrot.lane.b32.xlu0 %v1673_v16, %s2365_s4  ;;  %v1719_v16 = vsel %vm1552_vm8, %v1714_v8, %v1718_v18  ;;  %v1758_v8 = vrot.slane %v1744_v43, 3 }
 0x1bb   : > { %1206 = vrot.lane.b32.xlu1 %v1198_v11, %s2365_s4  ;;  %v1229_v11 = vmul.f32 %v2983_v2, %v3259_v34 }
 0x1bd   : > { %v3331_v38 = vpop.permute.xlu1 %692  ;;  %v1241_v44 = vrot.slane %v1229_v11, 2 }
 0x1be   : > { %1722 = vrot.lane.b32.xlu0 %v1715_v20, %s2365_s4  ;;  %v1233_v20 = vmul.f32 %v2983_v2, %v3268_v58  ;;  %v3362_v2 = vpop.permute.xlu0 %1208 }
 0x1bf   : > { %1210 = vrot.lane.b32.xlu1 %v1203_v62, %s2365_s4  ;;  %v1759_v62 = vrot.slane %v1746_v61, 3  ;;  %4454 = vst [vmem:[#allocation73_spill] sm:$0xff] %v3362_v2  ;;  %v1276_v61 = vmul.f32 %v3020_v21, %v2710_v42 }
 0x1c0   : > { %v1247_v36 = vrot.slane %v1233_v20, 2 }
 0x1c1   : > { %v3347_v22 = vpop.permute.xlu1 %696  ;;  %v1760_v52 = vsel %vm1552_vm8, %v1758_v8, %v1759_v62  ;;  %v1287_v20 = vrot.slane %v1276_v61, 2  ;;  %v1278_v8 = vmul.f32 %v3020_v21, %v3268_v58 }
 0x1c2   : > { %4451 = vst [vmem:[#allocation70_spill] sm:$0xff] %v3347_v22  ;;  %1726 = vrot.lane.b32.xlu0 %v1719_v16, %s2365_s4  ;;  %v1243_v22 = vsel %vm1083_vm7, %v1241_v44, %v1242_v60  ;;  %v1248_v43 = vsel %vm1083_vm7, %v1242_v60, %v1247_v36  ;;  %v3371_v44 = vstv %s2170_s18  ;;  %v3383_v42 = vpop.permute.xlu0 %1212 }
 0x1c3   : > { %1214 = vrot.lane.b32.xlu1 %v1202_v31, %s2365_s4  ;;  %v1763_v31 = vrot.slane %v1748_v55, 3  ;;  %v1789_v11 = vmul.f32 %v3371_v44, %v3231_v59  ;;  %v1791_v55 = vmul.f32 %v3199_v4, %v3371_v44  ;;  %4456 = vst [vmem:[#allocation75_spill] sm:$0xff] %v3383_v42  ;;  %v1292_v42 = vrot.slane %v1278_v8, 2 }
 0x1c5   : > { %v3357_v6 = vpop.permute.xlu1 %737 }
 0x1c6   : > { %4453 = vst [vmem:[#allocation72_spill] sm:$0xff] %v3357_v6  ;;  %1730 = vrot.lane.b32.xlu0 %v1718_v18, %s2365_s4  ;;  %v1764_v18 = vsel %vm1552_vm8, %v1759_v62, %v1763_v31  ;;  %v1803_v62 = vrot.slane %v1789_v11, 3  ;;  %v1293_v11 = vsel %vm1083_vm7, %v1287_v20, %v1292_v42 }
 0x1c7   : > { %1251 = vrot.lane.b32.xlu1 %v1243_v22, %s2365_s4  ;;  %v1274_v22 = vmul.f32 %v3020_v21, %v3259_v34  ;;  %v3396_v21 = vpop.permute.xlu0 %1216 }
 0x1c8   : > { %4458 = vst [vmem:[#allocation77_spill] sm:$0xff] %v3396_v21 }
 0x1c9   : > { %v3365_v16 = vpop.permute.xlu1 %741 }
 0x1ca   : > { %4455 = vst [vmem:[#allocation74_spill] sm:$0xff] %v3365_v16  ;;  %1767 = vrot.lane.b32.xlu0 %v1760_v52, %s2366_s15  ;;  %v1804_v52 = vrot.slane %v1791_v55, 3  ;;  %v1286_v16 = vrot.slane %v1274_v22, 2  ;;  %v3402_v55 = vld [vmem:[#allocation2 + $0x10] sm:$0xff] }
 0x1cb   : > { %1255 = vrot.lane.b32.xlu1 %v1248_v43, %s2365_s4  ;;  %v1793_v43 = vmul.f32 %v3371_v44, %v3245_v40  ;;  %v1321_v22 = vmul.f32 %v3402_v55, %v3057_v7 }
 0x1cc   : > { %v1288_v6 = vsel %vm1083_vm7, %v1286_v16, %v1287_v20  ;;  %v1805_v61 = vsel %vm1552_vm8, %v1803_v62, %v1804_v52  ;;  %v3407_v16 = vstv %s2171_s19  ;;  %v1319_v20 = vmul.f32 %v3057_v7, %v3259_v34  ;;  %s4308_s19 = scalar_lea.vmem %s4361_s3, %s2184_s11 }
 0x1cd   : > { %v3381_v60 = vpop.permute.xlu1 %782  ;;  %4460 = vst [vmem:[#allocation79_spill] sm:$0xff] %v3407_v16  ;;  %v1836_v8 = vmul.f32 %v3199_v4, %v3407_v16  ;;  %v1838_v21 = vmul.f32 %v3407_v16, %v3245_v40 }
 0x1ce   : > { %1771 = vrot.lane.b32.xlu0 %v1764_v18, %s2366_s15 }
 0x1cf   : > { %1259 = vrot.lane.b32.xlu1 %v1247_v36, %s2365_s4  ;;  %v1808_v36 = vrot.slane %v1793_v43, 3  ;;  %v3419_v43 = vpop.permute.xlu0 %1253 }
 0x1d1   : > { %v3391_v2 = vpop.permute.xlu1 %786 }
 0x1d2   : > { %4457 = vst [vmem:[#allocation76_spill] sm:$0xff] %v3391_v2  ;;  %1775 = vrot.lane.b32.xlu0 %v1763_v31, %s2366_s15  ;;  %v1834_v31 = vmul.f32 %v3407_v16, %v3231_v59  ;;  %v1331_v2 = vrot.slane %v1319_v20, 2 }
 0x1d3   : > { %1296 = vrot.lane.b32.xlu1 %v1288_v6, %s2366_s15  ;;  %v1809_v6 = vsel %vm1552_vm8, %v1804_v52, %v1808_v36 }
 0x1d4   : > { %v1848_v52 = vrot.slane %v1834_v31, 3 }
 0x1d5   : > { %v3399_v18 = vpop.permute.xlu1 %790 }
 0x1d6   : > { %4459 = vst [vmem:[#allocation78_spill] sm:$0xff] %v3399_v18  ;;  %1812 = vrot.lane.b32.xlu0 %v1805_v61, %s2366_s15  ;;  %v1332_v61 = vrot.slane %v1321_v22, 2  ;;  %v1323_v18 = vmul.f32 %v3057_v7, %v3268_v58  ;;  %v3432_v7 = vpop.permute.xlu0 %1257 }
 0x1d7   : > { %1300 = vrot.lane.b32.xlu1 %v1293_v11, %s2366_s15  ;;  %v1849_v11 = vrot.slane %v1836_v8, 3  ;;  %4462 = vst [vmem:[#allocation81_spill] sm:$0xff] %v3432_v7  ;;  %v1366_v8 = vmul.f32 %v3402_v55, %v3093_v25 }
 0x1d8   : > { %v1333_v41 = vsel %vm1083_vm7, %v1331_v2, %v1332_v61  ;;  %v1337_v23 = vrot.slane %v1323_v18, 2  ;;  %v3441_v2 = vstv %s2172_s23  ;;  %v1364_v18 = vmul.f32 %v3093_v25, %v3259_v34 }
 0x1d9   : > { %v3417_v62 = vpop.permute.xlu1 %827  ;;  %v1850_v22 = vsel %vm1552_vm8, %v1848_v52, %v1849_v11  ;;  %4464 = vst [vmem:[#allocation83_spill] sm:$0xff] %v3441_v2  ;;  %v1377_v52 = vrot.slane %v1366_v8, 2 }
 0x1da   : > { %1816 = vrot.lane.b32.xlu0 %v1809_v6, %s2366_s15  ;;  %v1338_v31 = vsel %vm1083_vm7, %v1332_v61, %v1337_v23  ;;  %v3453_v61 = vpop.permute.xlu0 %1261 }
 0x1db   : > { %1304 = vrot.lane.b32.xlu1 %v1292_v42, %s2366_s15  ;;  %v1853_v42 = vrot.slane %v1838_v21, 3  ;;  %v1881_v21 = vmul.f32 %v3199_v4, %v3441_v2  ;;  %4465 = vst [vmem:[#allocation84_spill] sm:$0xff] %v3453_v61 }
 0x1dd   : > { %v3427_v45 = vpop.permute.xlu1 %831 }
 0x1de   : > { %4461 = vst [vmem:[#allocation80_spill] sm:$0xff] %v3427_v45  ;;  %1820 = vrot.lane.b32.xlu0 %v1808_v36, %s2366_s15  ;;  %v1879_v36 = vmul.f32 %v3441_v2, %v3231_v59  ;;  %v1376_v45 = vrot.slane %v1364_v18, 2  ;;  %v1409_v18 = vmul.f32 %v3129_v53, %v3259_v34 }
 0x1df   : > { %1341 = vrot.lane.b32.xlu1 %v1333_v41, %s2366_s15  ;;  %v1854_v41 = vsel %vm1552_vm8, %v1849_v11, %v1853_v42 }
 0x1e0   : > { %v1893_v11 = vrot.slane %v1879_v36, 3  ;;  %v1378_v16 = vsel %vm1083_vm7, %v1376_v45, %v1377_v52  ;;  %v3475_v45 = vstv %s2173_s26 }
 0x1e1   : > { %v3435_v6 = vpop.permute.xlu1 %835  ;;  %4469 = vst [vmem:[#allocation88_spill] sm:$0xff] %v3475_v45 }
 0x1e2   : > { %4463 = vst [vmem:[#allocation82_spill] sm:$0xff] %v3435_v6  ;;  %1857 = vrot.lane.b32.xlu0 %v1850_v22, %s2366_s15  ;;  %v1368_v22 = vmul.f32 %v3093_v25, %v3268_v58  ;;  %v1883_v6 = vmul.f32 %v3441_v2, %v3245_v40  ;;  %v3466_v25 = vpop.permute.xlu0 %1298  ;;  %v1421_v2 = vrot.slane %v1409_v18, 2  ;;  %v1454_v18 = vmul.f32 %v3163_v17, %v3259_v34 }
 0x1e3   : > { %1345 = vrot.lane.b32.xlu1 %v1338_v31, %s2366_s15  ;;  %v1894_v31 = vrot.slane %v1881_v21, 3  ;;  %4467 = vst [vmem:[#allocation86_spill] sm:$0xff] %v3466_v25  ;;  %v1411_v21 = vmul.f32 %v3402_v55, %v3129_v53 }
 0x1e4   : > { %v1382_v61 = vrot.slane %v1368_v22, 2 }
 0x1e5   : > { %v3451_v20 = vpop.permute.xlu1 %872  ;;  %v1895_v8 = vsel %vm1552_vm8, %v1893_v11, %v1894_v31  ;;  %v1422_v11 = vrot.slane %v1411_v21, 2 }
 0x1e6   : > { %1861 = vrot.lane.b32.xlu0 %v1854_v41, %s2366_s15  ;;  %v1383_v36 = vsel %vm1083_vm7, %v1377_v52, %v1382_v61  ;;  %v3487_v22 = vpop.permute.xlu0 %1302 }
 0x1e7   : > { %1349 = vrot.lane.b32.xlu1 %v1337_v23, %s2366_s15  ;;  %v1898_v23 = vrot.slane %v1883_v6, 3  ;;  %v1926_v6 = vmul.f32 %v3199_v4, %v3475_v45  ;;  %4470 = vst [vmem:[#allocation89_spill] sm:$0xff] %v3487_v22  ;;  %v1423_v25 = vsel %vm1083_vm7, %v1421_v2, %v1422_v11  ;;  %v3509_v2 = vstv %s2174_s24 }
 0x1e8   : > { %4474 = vst [vmem:[#allocation93_spill] sm:$0xff] %v3509_v2 }
 0x1e9   : > { %v3461_v7 = vpop.permute.xlu1 %876 }
 0x1ea   : > { %4466 = vst [vmem:[#allocation85_spill] sm:$0xff] %v3461_v7  ;;  %1865 = vrot.lane.b32.xlu0 %v1853_v42, %s2366_s15  ;;  %v1924_v42 = vmul.f32 %v3475_v45, %v3231_v59  ;;  %v1928_v7 = vmul.f32 %v3475_v45, %v3245_v40 }
 0x1eb   : > { %1386 = vrot.lane.b32.xlu1 %v1378_v16, %s2366_s15  ;;  %v1899_v16 = vsel %vm1552_vm8, %v1894_v31, %v1898_v23 }
 0x1ec   : > { %v1938_v31 = vrot.slane %v1924_v42, 3 }
 0x1ed   : > { %v3469_v41 = vpop.permute.xlu1 %880 }
 0x1ee   : > { %4468 = vst [vmem:[#allocation87_spill] sm:$0xff] %v3469_v41  ;;  %1902 = vrot.lane.b32.xlu0 %v1895_v8, %s2367_s9  ;;  %v1413_v8 = vmul.f32 %v3129_v53, %v3268_v58  ;;  %v3500_v53 = vpop.permute.xlu0 %1306 }
 0x1ef   : > { %1390 = vrot.lane.b32.xlu1 %v1383_v36, %s2366_s15  ;;  %v1939_v36 = vrot.slane %v1926_v6, 3  ;;  %4472 = vst [vmem:[#allocation91_spill] sm:$0xff] %v3500_v53  ;;  %v1456_v6 = vmul.f32 %v3402_v55, %v3163_v17 }
 0x1f0   : > { %v1427_v22 = vrot.slane %v1413_v8, 2 }
 0x1f1   : > { %v3485_v52 = vpop.permute.xlu1 %917  ;;  %v1940_v21 = vsel %vm1552_vm8, %v1938_v31, %v1939_v36  ;;  %v1467_v31 = vrot.slane %v1456_v6, 2 }
 0x1f2   : > { %1906 = vrot.lane.b32.xlu0 %v1899_v16, %s2367_s9  ;;  %v1428_v42 = vsel %vm1083_vm7, %v1422_v11, %v1427_v22  ;;  %v3521_v8 = vpop.permute.xlu0 %1343 }
 0x1f3   : > { %1394 = vrot.lane.b32.xlu1 %v1382_v61, %s2366_s15  ;;  %v1943_v61 = vrot.slane %v1928_v7, 3  ;;  %v1971_v7 = vmul.f32 %v3199_v4, %v3509_v2  ;;  %4475 = vst [vmem:[#allocation94_spill] sm:$0xff] %v3521_v8  ;;  %v1973_v4 = vmul.f32 %v3509_v2, %v3245_v40  ;;  %v1501_v40 = vmul.f32 %v3402_v55, %v3192_v32  ;;  %v3696_v8 = vld [vmem:[#allocation2] sm:$0xfc] }
 0x1f5   : > { %v3495_v41 = vpop.permute.xlu1 %921 }
 0x1f6   : > { %4471 = vst [vmem:[#allocation90_spill] sm:$0xff] %v3495_v41  ;;  %1910 = vrot.lane.b32.xlu0 %v1898_v23, %s2367_s9  ;;  %v1969_v23 = vmul.f32 %v3509_v2, %v3231_v59  ;;  %v1984_v59 = vrot.slane %v1971_v7, 3  ;;  %v794_v41 = vsel %vm312_vm9, %v3381_v60, %v3041_v12  ;;  %v929_v12 = vsel %vm418_vm10, %v3485_v52, %v3149_v39 }
 0x1f7   : > { %1431 = vrot.lane.b32.xlu1 %v1423_v25, %s2367_s9  ;;  %v1944_v25 = vsel %vm1552_vm8, %v1939_v36, %v1943_v61 }
 0x1f8   : > { %v1983_v36 = vrot.slane %v1969_v23, 3 }
 0x1f9   : > { %v3503_v16 = vpop.permute.xlu1 %925 }
 0x1fa   : > { %4473 = vst [vmem:[#allocation92_spill] sm:$0xff] %v3503_v16  ;;  %1947 = vrot.lane.b32.xlu0 %v1940_v21, %s2367_s9  ;;  %v1458_v21 = vmul.f32 %v3163_v17, %v3268_v58  ;;  %v3534_v17 = vpop.permute.xlu0 %1347  ;;  %v1985_v6 = vsel %vm1552_vm8, %v1983_v36, %v1984_v59 }
 0x1fb   : > { %1435 = vrot.lane.b32.xlu1 %v1428_v42, %s2367_s9  ;;  %v1466_v42 = vrot.slane %v1454_v18, 2  ;;  %4477 = vst [vmem:[#allocation96_spill] sm:$0xff] %v3534_v17 }
 0x1fc   : > { %v1472_v16 = vrot.slane %v1458_v21, 2  ;;  %v1512_v21 = vrot.slane %v1501_v40, 2 }
 0x1fd   : > { %v3519_v11 = vpop.permute.xlu1 %962  ;;  %v1468_v45 = vsel %vm1083_vm7, %v1466_v42, %v1467_v31 }
 0x1fe   : > { %1951 = vrot.lane.b32.xlu0 %v1944_v25, %s2367_s9  ;;  %v1473_v23 = vsel %vm1083_vm7, %v1467_v31, %v1472_v16  ;;  %v3549_v18 = vpop.permute.xlu0 %1351  ;;  %v1503_v31 = vmul.f32 %v3192_v32, %v3268_v58  ;;  %v1610_v58 = vmul.f32 %v3402_v55, %v3226_v19 }
 0x1ff   : > { %1439 = vrot.lane.b32.xlu1 %v1427_v22, %s2367_s9  ;;  %v1988_v22 = vrot.slane %v1973_v4, 3  ;;  %4479 = vst [vmem:[#allocation98_spill] sm:$0xff] %v3549_v18 }
 0x200   : > { %v1517_v42 = vrot.slane %v1503_v31, 2 }
 0x201   : > { %v3529_v53 = vpop.permute.xlu1 %966 }
 0x202   : > { %4476 = vst [vmem:[#allocation95_spill] sm:$0xff] %v3529_v53  ;;  %1955 = vrot.lane.b32.xlu0 %v1943_v61, %s2367_s9  ;;  %v1989_v61 = vsel %vm1552_vm8, %v1984_v59, %v1988_v22 }
 0x203   : > { %1476 = vrot.lane.b32.xlu1 %v1468_v45, %s2367_s9  ;;  %v1499_v45 = vmul.f32 %v3192_v32, %v3259_v34  ;;  %v3560_v34 = vpop.permute.xlu0 %1388  ;;  %v1518_v32 = vsel %vm1083_vm7, %v1512_v21, %v1517_v42 }
 0x204   : > { %4481 = vst [vmem:[#allocation100_spill] sm:$0xff] %v3560_v34 }
 0x205   : > { %v3537_v25 = vpop.permute.xlu1 %970  ;;  %v1511_v36 = vrot.slane %v1499_v45, 2  ;;  %v1621_v45 = vrot.slane %v1610_v58, 3  ;;  %v3589_v58 = vstv %s2129_s29 }
 0x206   : > { %4478 = vst [vmem:[#allocation97_spill] sm:$0xff] %v3537_v25  ;;  %1992 = vrot.lane.b32.xlu0 %v1985_v6, %s2367_s9  ;;  %v383_v25 = vsel %vm312_vm9, %v3043_v10, %v2716_v49  ;;  %v489_v10 = vsel %vm418_vm10, %v3115_v57, %v2855_v51  ;;  %v595_v51 = vsel %vm524_vm11, %v3181_v50, %v2937_v1  ;;  %v3661_v1 = vstv %s3611_s5  ;;  %v255_v50 = vld [vmem:[#allocation2 + $0x20] sm:$0x7] }
 0x207   : > { %1480 = vrot.lane.b32.xlu1 %v1473_v23, %s2367_s9  ;;  %v1513_v59 = vsel %vm1083_vm7, %v1511_v36, %v1512_v21  ;;  %v3564_v23 = vld [vmem:[#allocation2] sm:$0xf8] }
 0x209   : > { %v3547_v7 = vpop.permute.xlu1 %1007 }
 0x20a   : > { %1996 = vrot.lane.b32.xlu0 %v1989_v61, %s2367_s9  ;;  %v3576_v61 = vpop.permute.xlu0 %1392 }
 0x20b   : > { %1484 = vrot.lane.b32.xlu1 %v1472_v16, %s2367_s9  ;;  %v3570_v16 = vld [vmem:[#allocation2 + $0x20] sm:$0x3f]  ;;  %4483 = vst [vmem:[#allocation102_spill] sm:$0xff] %v3576_v61  ;;  %v3623_v61 = vstv %s2141_s30 }
 0x20c   : > { %v1612_v31 = vmul.f32 %v3226_v19, %v3570_v16 }
 0x20d   : > { %v3555_v4 = vpop.permute.xlu1 %1011 }
 0x20e   : > { %4480 = vst [vmem:[#allocation99_spill] sm:$0xff] %v3555_v4  ;;  %2000 = vrot.lane.b32.xlu0 %v1988_v22, %s2367_s9  ;;  %v1608_v22 = vmul.f32 %v3226_v19, %v3564_v23  ;;  %v3585_v17 = vpop.permute.xlu0 %1396 }
 0x20f   : > { %1521 = vrot.lane.b32.xlu1 %v1513_v59, %s2367_s9  ;;  %4485 = vst [vmem:[#allocation104_spill] sm:$0xff] %v3585_v17 }
 0x210   : > { %v1620_v21 = vrot.slane %v1608_v22, 3  ;;  %v1653_v22 = vmul.f32 %v3264_v37, %v3564_v23 }
 0x211   : > { %v3562_v6 = vpop.permute.xlu1 %1015 }
 0x212   : > { %4482 = vst [vmem:[#allocation101_spill] sm:$0xff] %v3562_v6  ;;  %v1622_v59 = vsel %vm1552_vm8, %v1620_v21, %v1621_v45  ;;  %v3605_v4 = vpop.permute.xlu0 %1433 }
 0x213   : > { %1525 = vrot.lane.b32.xlu1 %v1518_v32, %s2367_s9  ;;  %v1626_v32 = vrot.slane %v1612_v31, 3  ;;  %v3599_v31 = vld [vmem:[#allocation2] sm:$0xff]  ;;  %4487 = vst [vmem:[#allocation106_spill] sm:$0xff] %v3605_v4 }
 0x214   : > { %v274_v21 = vmul.f32 %v3599_v31, %v3589_v58  ;;  %v3621_v4 = vld [vmem:[#allocation2] sm:$0xfe] }
 0x215   : > { %v3574_v40 = vpop.permute.xlu1 %1052  ;;  %v1627_v19 = vsel %vm1552_vm8, %v1621_v45, %v1626_v32  ;;  %v3607_v45 = vstv %s2127_s22 }
 0x216   : > { %v1064_v39 = vsel %vm524_vm11, %v3574_v40, %v3254_v13 }
 0x217   : > { %1529 = vrot.lane.b32.xlu1 %v1517_v42, %s2367_s9  ;;  %v1655_v42 = vmul.f32 %v3402_v55, %v3264_v37 }
 0x219   : > { %v3581_v36 = vpop.permute.xlu1 %1056  ;;  %v1666_v17 = vrot.slane %v1655_v42, 3  ;;  %v1665_v42 = vrot.slane %v1653_v22, 3 }
 0x21a   : > { %4484 = vst [vmem:[#allocation103_spill] sm:$0xff] %v3581_v36  ;;  %v313_v36 = vsel %vm312_vm9, %v2993_v24, %v2654_v3  ;;  %v419_v3 = vsel %vm418_vm10, %v3069_v33, %v2793_v56  ;;  %v525_v33 = vsel %vm524_vm11, %v3141_v0, %v2883_v14  ;;  %v627_v14 = vstv %s3666_s8 }
 0x21b   : > { %1630 = vrot.lane.b32.xlu1 %v1622_v59, %s2365_s4  ;;  %v1667_v49 = vsel %vm1552_vm8, %v1665_v42, %v1666_v17 }
 0x21d   : > { %v3587_v2 = vpop.permute.xlu1 %1060 }
 0x21e   : > { %4486 = vst [vmem:[#allocation105_spill] sm:$0xff] %v3587_v2  ;;  %v3643_v2 = vpop.permute.xlu0 %1437 }
 0x21f   : > { %1634 = vrot.lane.b32.xlu1 %v1627_v19, %s2365_s4  ;;  %v1657_v19 = vmul.f32 %v3264_v37, %v3570_v16  ;;  %v277_v37 = vadd.f32 %v274_v21, %v3607_v45  ;;  %v647_v21 = vmul.f32 %v3623_v61, %v3621_v4  ;;  %4490 = vst [vmem:[#allocation109_spill] sm:$0xff] %v3643_v2 }
 0x221   : > { %v3603_v59 = vpop.permute.xlu1 %1161  ;;  %v1671_v22 = vrot.slane %v1657_v19, 3  ;;  %v389_v34 = vadd.f32 %v383_v25, %v277_v37  ;;  %v1700_v37 = vmul.f32 %v3402_v55, %v3303_v26  ;;  %v653_v18 = vrot.slane %v647_v21, 1 }
 0x222   : > { %v3676_v25 = vstv %s3626_s25 }
 0x223   : > { %1638 = vrot.lane.b32.xlu1 %v1626_v32, %s2365_s4  ;;  %v3630_v32 = vmul.f32 %v3402_v55, %v3623_v61  ;;  %v495_v57 = vadd.f32 %v489_v10, %v389_v34  ;;  %v1672_v42 = vsel %vm1552_vm8, %v1666_v17, %v1671_v22  ;;  %v3664_v34 = vstv %s3613_s27 }
 0x224   : > { %v1698_v17 = vmul.f32 %v3303_v26, %v3564_v23  ;;  %v3673_v10 = vstv %s3616_s6  ;;  %v1711_v6 = vrot.slane %v1700_v37, 3 }
 0x225   : > { %4488 = vst [vmem:[#allocation107_spill] sm:$0xff] %v3630_v32  ;;  %v3632_v53 = vpop.permute.xlu1 %1165  ;;  %v601_v2 = vadd.f32 %v595_v51, %v495_v57  ;;  %v4492_v21 = vrot.slane %v3630_v32, 1 }
 0x226   : > { %4489 = vst [vmem:[#allocation108_spill] sm:$0xff] %v3632_v53  ;;  %v3646_v53 = vstv %s3595_s21  ;;  %v1710_v24 = vrot.slane %v1698_v17, 3 }
 0x227   : > { %1675 = vrot.lane.b32.xlu1 %v1667_v49, %s2365_s4  ;;  %v258_v49 = vmul.f32 %v3599_v31, %v3646_v53  ;;  %v655_v51 = vsel %vm614_vm5, %v653_v18, %v4492_v21  ;;  %v1702_v18 = vmul.f32 %v3303_v26, %v3570_v16 }
 0x228   : > { %v661_v32 = vadd.f32 %v655_v51, %v601_v2  ;;  %v608_v2 = vmul.f32 %v3676_v25, %v3621_v4  ;;  %v1712_v52 = vsel %vm1552_vm8, %v1710_v24, %v1711_v6  ;;  %v3746_v24 = vstv %s3681_s10 }
 0x229   : > { %v3652_v19 = vpop.permute.xlu1 %1169  ;;  %v261_v21 = vadd.f32 %v258_v49, %v3661_v1 }
 0x22a   : > { %4491 = vst [vmem:[#allocation110_spill] sm:$0xff] %v3652_v19  ;;  %v3688_v19 = vpop.permute.xlu0 %1441 }
 0x22b   : > { %1679 = vrot.lane.b32.xlu1 %v1672_v42, %s2365_s4  ;;  %v3686_v42 = vstv %s3634_s7  ;;  %4494 = vst [vmem:[#allocation112_spill] sm:$0xff] %v3688_v19  ;;  %v3704_v19 = vmul.f32 %v3402_v55, %v3676_v25  ;;  %v319_v60 = vadd.f32 %v313_v36, %v261_v21  ;;  %v1716_v36 = vrot.slane %v1702_v18, 3 }
 0x22c   : > { %v3715_v26 = vmul.f32 %v3402_v55, %v3686_v42  ;;  %v1116_v56 = vmul.f32 %v3686_v42, %v3696_v8  ;;  %v3739_v21 = vstv %s3668_s28 }
 0x22d   : > { %v3683_v57 = vpop.permute.xlu1 %1206  ;;  %v425_v49 = vadd.f32 %v419_v3, %v319_v60  ;;  %v1717_v60 = vsel %vm1552_vm8, %v1711_v6, %v1716_v36 }
 0x22e   : > { %4493 = vst [vmem:[#allocation111_spill] sm:$0xff] %v3683_v57  ;;  %v260_v57 = vmul.f32 %v3646_v53, %v255_v50  ;;  %v3734_v51 = vpop.permute.xlu0 %1478 }
 0x22f   : > { %1683 = vrot.lane.b32.xlu1 %v1671_v22, %s2365_s4  ;;  %v800_v22 = vadd.f32 %v794_v41, %v661_v32  ;;  %v266_v41 = vmul.f32 %v3599_v31, %v3673_v10  ;;  %v268_v32 = vmul.f32 %v3673_v10, %v255_v50  ;;  %v531_v18 = vadd.f32 %v525_v33, %v425_v49 }
 0x230   : > { %v3743_v40 = vadd.f32 %v260_v57, %v3661_v1  ;;  %v276_v57 = vmul.f32 %v3589_v58, %v255_v50  ;;  %v3759_v33 = vmul.f32 %v3402_v55, %v627_v14  ;;  %v1743_v50 = vmul.f32 %v3337_v48, %v3564_v23 }
 0x231   : > { %v3719_v37 = vpop.permute.xlu1 %1210  ;;  %v935_v17 = vadd.f32 %v929_v12, %v800_v22  ;;  %v615_v12 = vrot.slane %v608_v2, 1  ;;  %v1122_v22 = vrot.slane %v1116_v56, 2  ;;  %v269_v0 = vadd.f32 %v266_v41, %v3664_v34 }
 0x232   : > { %v3755_v13 = vadd.f32 %v268_v32, %v3664_v34  ;;  %v4495_v2 = vrot.slane %v3704_v19, 1  ;;  %v704_v56 = vsel %vm312_vm9, %v3331_v38, %v2969_v29  ;;  %v3775_v49 = vmul.f32 %v3402_v55, %v3739_v21 }
 0x233   : > { %1720 = vrot.lane.b32.xlu1 %v1712_v52, %s2365_s4  ;;  %v1070_v31 = vadd.f32 %v1064_v39, %v935_v17  ;;  %v1745_v52 = vmul.f32 %v3402_v55, %v3337_v48  ;;  %v4496_v39 = vrot.slane %v3715_v26, 2  ;;  %v348_v29 = vsel %vm312_vm9, %v3014_v28, %v2674_v15 }
 0x234   : > { %v617_v6 = vsel %vm614_vm5, %v615_v12, %v4495_v2  ;;  %v3779_v12 = vmul.f32 %v3337_v48, %v3570_v16  ;;  %v3781_v2 = vpop.permute.xlu0 %1482  ;;  %v839_v38 = vsel %vm418_vm10, %v3417_v62, %v3077_v30  ;;  %v1077_v48 = vmul.f32 %v3739_v21, %v3696_v8  ;;  %v605_v30 = vld [vmem:[#allocation2 + $0x20] sm:$0xf] }
 0x235   : > { %v3748_v3 = vpop.permute.xlu1 %1214  ;;  %v1124_v41 = vsel %vm1083_vm7, %v1122_v22, %v4496_v39  ;;  %v623_v32 = vadd.f32 %v617_v6, %v531_v18  ;;  %v1756_v22 = vrot.slane %v1745_v52, 3  ;;  %v454_v15 = vsel %vm418_vm10, %v3087_v27, %v2829_v47 }
 0x236   : > { %v259_v28 = vmul.f32 %v3402_v55, %v3646_v53  ;;  %v974_v62 = vsel %vm524_vm11, %v3519_v11, %v3179_v5  ;;  %v354_v52 = vadd.f32 %v348_v29, %v269_v0  ;;  %v560_v47 = vsel %vm524_vm11, %v3159_v9, %v2907_v46 }
 0x237   : > { %1724 = vrot.lane.b32.xlu1 %v1717_v60, %s2365_s4  ;;  %v1130_v60 = vadd.f32 %v1124_v41, %v1070_v31  ;;  %v3792_v31 = vadd.f32 %v276_v57, %v3607_v45  ;;  %v710_v6 = vadd.f32 %v704_v56, %v623_v32  ;;  %v628_v57 = vmul.f32 %v627_v14, %v3621_v4 }
 0x238   : > { %v4379_v41 = vrot.slane %v3775_v49, 2  ;;  %v4377_v27 = vrot.slane %v3759_v33, 1  ;;  %v1761_v32 = vrot.slane %v3779_v12, 3  ;;  %v460_v5 = vadd.f32 %v454_v15, %v354_v52 }
 0x239   : > { %v1252_v17 = vpop.permute.xlu1 %1251  ;;  %v845_v56 = vadd.f32 %v839_v38, %v710_v6  ;;  %v3818_v11 = vmul.f32 %v3623_v61, %v605_v30  ;;  %v1084_v0 = vrot.slane %v1077_v48, 2  ;;  %v267_v46 = vmul.f32 %v3402_v55, %v3673_v10 }
 0x23a   : > { %v1263_v18 = vsel %vm312_vm9, %v1252_v17, %v3419_v43  ;;  %v1755_v43 = vrot.slane %v1743_v50, 3  ;;  %v3821_v50 = vpop.permute.xlu0 %1486  ;;  %v3824_v17 = vadd.f32 %v259_v28, %v3661_v1  ;;  %v275_v9 = vmul.f32 %v3402_v55, %v3589_v58 }
 0x23b   : > { %v3796_v39 = vadd.f32 %v1263_v18, %v1130_v60  ;;  %1728 = vrot.lane.b32.xlu1 %v1716_v36, %s2365_s4  ;;  %v980_v4 = vadd.f32 %v974_v62, %v845_v56  ;;  %v3831_v60 = vmul.f32 %v3676_v25, %v605_v30  ;;  %v566_v61 = vadd.f32 %v560_v47, %v460_v5  ;;  %v4501_v5 = vld [vmem:[#allocation26_spill] sm:$0xff]  ;;  %s2163_s4 = sld [smem:[#allocation3 + $0xc]] }
 0x23c   : > { %v1757_v53 = vsel %vm1552_vm8, %v1755_v43, %v1756_v22  ;;  %v3833_v12 = vmul.f32 %v627_v14, %v605_v30  ;;  %v634_v29 = vrot.slane %v628_v57, 1  ;;  %v1086_v38 = vsel %vm1083_vm7, %v1084_v0, %v4379_v41 }
 0x23d   : > { %v3809_v36 = vpop.permute.xlu1 %1255  ;;  %v350_v1 = vsel %vm312_vm9, %v3032_v54, %v2701_v35  ;;  %v1173_v58 = vsel %vm312_vm9, %v3603_v59, %v3315_v63  ;;  %v1762_v25 = vsel %vm1552_vm8, %v1756_v22, %v1761_v32  ;;  %v1790_v10 = vmul.f32 %v3402_v55, %v3371_v44  ;;  %v4497_v35 = vld [vmem:[#allocation20_spill] sm:$0xff]  ;;  %v4498_v54 = vld [vmem:[#allocation41_spill] sm:$0xff]  ;;  %v4499_v59 = vld [vmem:[#allocation31_spill] sm:$0xff] }
 0x23e   : > { %v636_v14 = vsel %vm614_vm5, %v634_v29, %v4377_v27  ;;  %v656_v6 = vrot.slane %v3818_v11, 1  ;;  %v1092_v48 = vadd.f32 %v1086_v38, %v980_v4  ;;  %v3855_v15 = vmul.f32 %v3402_v55, %v3746_v24  ;;  %v4500_v22 = vld [vmem:[#allocation72_spill] sm:$0xff]  ;;  %v4502_v4 = vld [vmem:[#allocation49_spill] sm:$0xff]  ;;  %v4503_v29 = vld [vmem:[#allocation42_spill] sm:$0xff] }
 0x23f   : > { %1765 = vrot.lane.b32.xlu1 %v1757_v53, %s2366_s15  ;;  %v456_v63 = vsel %vm418_vm10, %v4498_v54, %v4497_v35  ;;  %v749_v28 = vsel %vm312_vm9, %v4500_v22, %v4499_v59  ;;  %v1097_v30 = vmul.f32 %v3746_v24, %v3696_v8  ;;  %v1788_v62 = vmul.f32 %v3371_v44, %v3564_v23  ;;  %v3873_v53 = vpop.permute.xlu0 %1523  ;;  %v4504_v38 = vld [vmem:[#allocation86_spill] sm:$0xff]  ;;  %v4524_v27 = vld [vmem:[#allocation44_spill] sm:$0xff] }
 0x240   : > { %v356_v43 = vadd.f32 %v350_v1, %v3755_v13  ;;  %v642_v52 = vadd.f32 %v636_v14, %v566_v61  ;;  %v1179_v57 = vadd.f32 %v1173_v58, %v1092_v48  ;;  %v3871_v47 = vmul.f32 %v3371_v44, %v3570_v16  ;;  %v4505_v35 = vld [vmem:[#allocation54_spill] sm:$0xff] }
 0x241   : > { %v3838_v18 = vpop.permute.xlu1 %1259  ;;  %v562_v0 = vsel %vm524_vm11, %v4502_v4, %v4501_v5  ;;  %v884_v8 = vsel %vm418_vm10, %v3451_v20, %v4503_v29  ;;  %v1801_v61 = vrot.slane %v1790_v10, 3  ;;  %v3888_v14 = vadd.f32 %v267_v46, %v3664_v34  ;;  %v3894_v54 = vld [vmem:[#allocation2 + $0x20] sm:$0x1f]  ;;  %v4510_v4 = vld [vmem:[#allocation21_spill] sm:$0xff] }
 0x242   : > { %v462_v1 = vadd.f32 %v456_v63, %v356_v43  ;;  %v755_v58 = vadd.f32 %v749_v28, %v642_v52  ;;  %v278_v48 = vadd.f32 %v275_v9, %v3607_v45  ;;  %v1019_v20 = vsel %vm524_vm11, %v3547_v7, %v4505_v35  ;;  %v4507_v52 = vld [vmem:[#allocation57_spill] sm:$0xff]  ;;  %v4508_v9 = vld [vmem:[#allocation107_spill] sm:$0xff]  ;;  %v4553_v45 = vld [vmem:[#allocation46_spill] sm:$0xff] }
 0x243   : > { %1769 = vrot.lane.b32.xlu1 %v1762_v25, %s2366_s15  ;;  %v4376_v25 = vrot.slane %v3855_v15, 2  ;;  %v1800_v10 = vrot.slane %v1788_v62, 3  ;;  %v1103_v22 = vrot.slane %v1097_v30, 2  ;;  %v1806_v43 = vrot.slane %v3871_v47, 3  ;;  %v3918_v5 = vpop.permute.xlu0 %1527 }
 0x244   : > { %v568_v63 = vadd.f32 %v562_v0, %v462_v1  ;;  %v890_v59 = vadd.f32 %v884_v8, %v755_v58  ;;  %v4378_v46 = vrot.slane %v3833_v12, 1  ;;  %v4509_v62 = vrot.slane %v4508_v9, 1  ;;  %v4511_v0 = vld [vmem:[#allocation61_spill] sm:$0xff]  ;;  %v4512_v8 = vld [vmem:[#allocation34_spill] sm:$0xff]  ;;  %v4514_v58 = vld [vmem:[#allocation79_spill] sm:$0xff] }
 0x245   : > { %v1297_v56 = vpop.permute.xlu1 %1296  ;;  %v1802_v7 = vsel %vm1552_vm8, %v1800_v10, %v1801_v61  ;;  %v3915_v47 = vmul.f32 %v3746_v24, %v3894_v54  ;;  %v490_v29 = vsel %vm418_vm10, %v4511_v0, %v4510_v4  ;;  %v3928_v1 = vmul.f32 %v3686_v42, %v3894_v54  ;;  %v4518_v9 = vld [vmem:[#allocation66_spill] sm:$0xff]  ;;  %v4521_v4 = vld [vmem:[#allocation73_spill] sm:$0xff]  ;;  %v4522_v0 = vld [vmem:[#allocation111_spill] sm:$0xff] }
 0x246   : > { %v1308_v13 = vsel %vm418_vm10, %v1297_v56, %v4504_v38  ;;  %v657_v30 = vsel %vm614_vm5, %v4509_v62, %v656_v6  ;;  %v1105_v56 = vsel %vm1083_vm7, %v1103_v22, %v4376_v25  ;;  %v4513_v38 = vld [vmem:[#allocation68_spill] sm:$0xff]  ;;  %v1835_v24 = vmul.f32 %v3402_v55, %v4514_v58 }
 0x247   : > { %v3884_v44 = vadd.f32 %v1308_v13, %v1179_v57  ;;  %1773 = vrot.lane.b32.xlu1 %v1761_v32, %s2366_s15  ;;  %v4506_v32 = vld [vmem:[#allocation15_spill] sm:$0xff]  ;;  %v1025_v57 = vadd.f32 %v1019_v20, %v890_v59  ;;  %v751_v13 = vsel %vm312_vm9, %v4513_v38, %v4512_v8  ;;  %v644_v20 = vadd.f32 %v4378_v46, %v568_v63  ;;  %v4526_v46 = vld [vmem:[#allocation101_spill] sm:$0xff] }
 0x248   : > { %v384_v34 = vsel %vm312_vm9, %v4507_v52, %v4506_v32  ;;  %v1807_v59 = vsel %vm1552_vm8, %v1801_v61, %v1806_v43  ;;  %v3939_v22 = vmul.f32 %v4514_v58, %v3570_v16  ;;  %v4515_v32 = vld [vmem:[#allocation16_spill] sm:$0xff]  ;;  %v1218_v61 = vsel %vm312_vm9, %v4522_v0, %v4521_v4  ;;  %v4530_v0 = vld [vmem:[#allocation94_spill] sm:$0xff] }
 0x249   : > { %v3896_v28 = vpop.permute.xlu1 %1300  ;;  %v390_v35 = vadd.f32 %v384_v34, %v278_v48  ;;  %v4516_v52 = vld [vmem:[#allocation36_spill] sm:$0xff]  ;;  %v4519_v48 = vld [vmem:[#allocation45_spill] sm:$0xff]  ;;  %v4520_v34 = vld [vmem:[#allocation87_spill] sm:$0xff]  ;;  %v757_v38 = vadd.f32 %v751_v13, %v644_v20  ;;  %v1111_v25 = vadd.f32 %v1105_v56, %v1025_v57  ;;  %v1846_v41 = vrot.slane %v1835_v24, 3  ;;  %v3964_v20 = vpop.permute.xlu0 %1531 }
 0x24a   : > { %v385_v42 = vsel %vm312_vm9, %v4516_v52, %v4515_v32  ;;  %v886_v63 = vsel %vm418_vm10, %v4520_v34, %v4519_v48  ;;  %v1833_v32 = vmul.f32 %v4514_v58, %v3564_v23  ;;  %v4523_v52 = vld [vmem:[#allocation22_spill] sm:$0xff]  ;;  %v4380_v34 = vrot.slane %v3915_v47, 2  ;;  %4527 = vst [vmem:[#allocation20_spill] sm:$0xff] %v3964_v20  ;;  %v4528_v58 = vld [vmem:[#allocation28_spill] sm:$0xff] }
 0x24b   : > { %1810 = vrot.lane.b32.xlu1 %v1802_v7, %s2366_s15  ;;  %v4517_v7 = vld [vmem:[#allocation27_spill] sm:$0xff]  ;;  %v496_v8 = vadd.f32 %v490_v29, %v390_v35  ;;  %v391_v29 = vadd.f32 %v385_v42, %v3792_v31  ;;  %v892_v57 = vadd.f32 %v886_v63, %v757_v38  ;;  %v1224_v56 = vadd.f32 %v1218_v61, %v1111_v25  ;;  %v4531_v42 = vld [vmem:[#allocation12_spill] sm:$0xff] }
 0x24c   : > { %v596_v62 = vsel %vm524_vm11, %v4518_v9, %v4517_v7  ;;  %v491_v7 = vsel %vm418_vm10, %v4524_v27, %v4523_v52  ;;  %v4525_v9 = vld [vmem:[#allocation59_spill] sm:$0xff]  ;;  %v1851_v52 = vrot.slane %v3939_v22, 3  ;;  %v1845_v25 = vrot.slane %v1833_v32, 3 }
 0x24d   : > { %v3934_v10 = vpop.permute.xlu1 %1304  ;;  %v1021_v48 = vsel %vm524_vm11, %v4526_v46, %v4525_v9  ;;  %v602_v13 = vadd.f32 %v596_v62, %v496_v8  ;;  %v497_v24 = vadd.f32 %v491_v7, %v391_v29  ;;  %v4532_v62 = vld [vmem:[#allocation53_spill] sm:$0xff]  ;;  %v4533_v61 = vld [vmem:[#allocation35_spill] sm:$0xff]  ;;  %v4534_v8 = vld [vmem:[#allocation76_spill] sm:$0xff] }
 0x24e   : > { %v1027_v9 = vadd.f32 %v1021_v48, %v892_v57  ;;  %v314_v63 = vsel %vm312_vm9, %v4532_v62, %v4531_v42  ;;  %v795_v38 = vsel %vm312_vm9, %v4534_v8, %v4533_v61  ;;  %v4536_v7 = vld [vmem:[#allocation13_spill] sm:$0xff]  ;;  %v4537_v48 = vld [vmem:[#allocation32_spill] sm:$0xff]  ;;  %v4540_v42 = vld [vmem:[#allocation47_spill] sm:$0xff] }
 0x24f   : > { %1814 = vrot.lane.b32.xlu1 %v1807_v59, %s2366_s15  ;;  %v4529_v59 = vld [vmem:[#allocation51_spill] sm:$0xff]  ;;  %v662_v29 = vadd.f32 %v657_v30, %v602_v13  ;;  %v4541_v62 = vld [vmem:[#allocation90_spill] sm:$0xff]  ;;  %v4542_v8 = vld [vmem:[#allocation77_spill] sm:$0xff] }
 0x250   : > { %v597_v4 = vsel %vm524_vm11, %v4529_v59, %v4528_v58  ;;  %v4535_v58 = vld [vmem:[#allocation83_spill] sm:$0xff]  ;;  %v4538_v59 = vld [vmem:[#allocation17_spill] sm:$0xff]  ;;  %v930_v61 = vsel %vm418_vm10, %v4541_v62, %v4540_v42  ;;  %v1220_v27 = vsel %vm312_vm9, %v3748_v3, %v4542_v8  ;;  %v4544_v30 = vld [vmem:[#allocation38_spill] sm:$0xff] }
 0x251   : > { %v1342_v35 = vpop.permute.xlu1 %1341  ;;  %v3986_v22 = vmul.f32 %v3402_v55, %v4535_v58  ;;  %v603_v32 = vadd.f32 %v597_v4, %v497_v24  ;;  %v4543_v4 = vld [vmem:[#allocation18_spill] sm:$0xff]  ;;  %v320_v24 = vadd.f32 %v314_v63, %v3824_v17  ;;  %v4546_v42 = vld [vmem:[#allocation23_spill] sm:$0xff]  ;;  %v4548_v62 = vld [vmem:[#allocation37_spill] sm:$0xff] }
 0x252   : > { %v1353_v46 = vsel %vm418_vm10, %v1342_v35, %v4530_v0  ;;  %v1878_v35 = vmul.f32 %v4535_v58, %v3564_v23  ;;  %v4539_v0 = vld [vmem:[#allocation58_spill] sm:$0xff]  ;;  %v421_v13 = vsel %vm418_vm10, %v4544_v30, %v4543_v4  ;;  %v4550_v30 = vld [vmem:[#allocation63_spill] sm:$0xff] }
 0x253   : > { %v3973_v31 = vadd.f32 %v1353_v46, %v1224_v56  ;;  %1818 = vrot.lane.b32.xlu1 %v1806_v43, %s2366_s15  ;;  %v315_v43 = vsel %vm312_vm9, %v4537_v48, %v4536_v7  ;;  %v1847_v56 = vsel %vm1552_vm8, %v1845_v25, %v1846_v41  ;;  %v420_v46 = vsel %vm418_vm10, %v4539_v0, %v4538_v59  ;;  %v4011_v59 = vpop.permute.xlu0 %1632  ;;  %v4547_v3 = vld [vmem:[#allocation62_spill] sm:$0xff]  ;;  %v4551_v17 = vld [vmem:[#allocation103_spill] sm:$0xff] }
 0x254   : > { %v1852_v7 = vsel %vm1552_vm8, %v1846_v41, %v1851_v52  ;;  %v801_v25 = vadd.f32 %v795_v38, %v662_v29  ;;  %v1113_v48 = vadd.f32 %v4380_v34, %v1027_v9  ;;  %4545 = vst [vmem:[#allocation41_spill] sm:$0xff] %v4011_v59  ;;  %v321_v0 = vadd.f32 %v315_v43, %v3743_v40  ;;  %v4549_v8 = vld [vmem:[#allocation78_spill] sm:$0xff]  ;;  %v4552_v43 = vld [vmem:[#allocation24_spill] sm:$0xff] }
 0x255   : > { %v3991_v57 = vpop.permute.xlu1 %1345  ;;  %v526_v41 = vsel %vm524_vm11, %v4547_v3, %v4546_v42  ;;  %v796_v4 = vsel %vm312_vm9, %v4549_v8, %v4548_v62  ;;  %v1065_v63 = vsel %vm524_vm11, %v4551_v17, %v4550_v30  ;;  %v426_v38 = vadd.f32 %v420_v46, %v320_v24  ;;  %v4554_v3 = vld [vmem:[#allocation48_spill] sm:$0xff]  ;;  %v4556_v8 = vld [vmem:[#allocation98_spill] sm:$0xff] }
 0x256   : > { %v663_v9 = vadd.f32 %v656_v6, %v603_v32  ;;  %v936_v29 = vadd.f32 %v930_v61, %v801_v25  ;;  %v427_v40 = vadd.f32 %v421_v13, %v321_v0  ;;  %v527_v42 = vsel %vm524_vm11, %v4553_v45, %v4552_v43  ;;  %v4555_v59 = vld [vmem:[#allocation92_spill] sm:$0xff]  ;;  %v4559_v32 = vld [vmem:[#allocation65_spill] sm:$0xff]  ;;  %v4564_v17 = vld [vmem:[#allocation70_spill] sm:$0xff] }
 0x257   : > { %1855 = vrot.lane.b32.xlu1 %v1847_v56, %s2366_s15  ;;  %v1226_v56 = vadd.f32 %v1220_v27, %v1113_v48  ;;  %v931_v62 = vsel %vm418_vm10, %v4555_v59, %v4554_v3  ;;  %v532_v30 = vadd.f32 %v526_v41, %v426_v38  ;;  %v4557_v6 = vrot.slane %v3831_v60, 1  ;;  %v4560_v61 = vld [vmem:[#allocation105_spill] sm:$0xff]  ;;  %v4567_v43 = vld [vmem:[#allocation14_spill] sm:$0xff] }
 0x258   : > { %v802_v46 = vadd.f32 %v796_v4, %v663_v9  ;;  %v1071_v24 = vadd.f32 %v1065_v63, %v936_v29  ;;  %v4558_v27 = vrot.slane %v3704_v19, 1  ;;  %v1066_v13 = vsel %vm524_vm11, %v4560_v61, %v4559_v32  ;;  %v4058_v4 = vpop.permute.xlu0 %1636  ;;  %v4565_v63 = vld [vmem:[#allocation81_spill] sm:$0xff]  ;;  %v4566_v9 = vld [vmem:[#allocation100_spill] sm:$0xff]  ;;  %v4574_v61 = vld [vmem:[#allocation30_spill] sm:$0xff] }
 0x259   : > { %v1350_v34 = vpop.permute.xlu1 %1349  ;;  %v1891_v25 = vrot.slane %v3986_v22, 3  ;;  %v4561_v19 = vrot.slane %v3928_v1, 2  ;;  %v4562_v59 = vrot.slane %v3715_v26, 2  ;;  %v4563_v22 = vld [vmem:[#allocation29_spill] sm:$0xff]  ;;  %v1264_v38 = vsel %vm312_vm9, %v3809_v36, %v4565_v63 }
 0x25a   : > { %v1355_v20 = vsel %vm418_vm10, %v1350_v34, %v4556_v8  ;;  %v619_v45 = vsel %vm614_vm5, %v4558_v27, %v4557_v6  ;;  %v4047_v34 = vmul.f32 %v4535_v58, %v3570_v16  ;;  %v937_v48 = vadd.f32 %v931_v62, %v802_v46  ;;  %v4569_v62 = vld [vmem:[#allocation39_spill] sm:$0xff]  ;;  %v4570_v8 = vld [vmem:[#allocation80_spill] sm:$0xff] }
 0x25b   : > { %v4033_v11 = vadd.f32 %v1355_v20, %v1226_v56  ;;  %1859 = vrot.lane.b32.xlu1 %v1852_v7, %s2366_s15  ;;  %v533_v20 = vadd.f32 %v527_v42, %v427_v40  ;;  %v4051_v7 = vmul.f32 %v3739_v21, %v3894_v54  ;;  %v1126_v0 = vsel %vm1083_vm7, %v4562_v59, %v4561_v19  ;;  %v4568_v42 = vld [vmem:[#allocation55_spill] sm:$0xff]  ;;  %v4572_v6 = vld [vmem:[#allocation60_spill] sm:$0xff]  ;;  %v4576_v19 = vld [vmem:[#allocation50_spill] sm:$0xff] }
 0x25c   : > { %v705_v58 = vsel %vm312_vm9, %v4564_v17, %v4563_v22  ;;  %v1890_v54 = vrot.slane %v1878_v35, 3  ;;  %v624_v29 = vadd.f32 %v619_v45, %v532_v30  ;;  %v1072_v56 = vadd.f32 %v1066_v13, %v937_v48  ;;  %v4571_v30 = vld [vmem:[#allocation19_spill] sm:$0xff]  ;;  %v4579_v22 = vld [vmem:[#allocation102_spill] sm:$0xff] }
 0x25d   : > { %v1387_v41 = vpop.permute.xlu1 %1386  ;;  %v1131_v26 = vadd.f32 %v1126_v0, %v1071_v24  ;;  %v349_v3 = vsel %vm312_vm9, %v4568_v42, %v4567_v43  ;;  %v840_v36 = vsel %vm418_vm10, %v4570_v8, %v4569_v62  ;;  %v1896_v35 = vrot.slane %v4047_v34, 3  ;;  %v4575_v13 = vld [vmem:[#allocation67_spill] sm:$0xff]  ;;  %v4585_v8 = vld [vmem:[#allocation52_spill] sm:$0xff] }
 0x25e   : > { %v1398_v21 = vsel %vm418_vm10, %v1387_v41, %v4566_v9  ;;  %v1892_v46 = vsel %vm1552_vm8, %v1890_v54, %v1891_v25  ;;  %v455_v24 = vsel %vm418_vm10, %v4572_v6, %v4571_v30  ;;  %v706_v48 = vsel %vm312_vm9, %v4575_v13, %v4574_v61  ;;  %v4577_v59 = vld [vmem:[#allocation95_spill] sm:$0xff]  ;;  %v4578_v41 = vld [vmem:[#allocation84_spill] sm:$0xff]  ;;  %v4102_v9 = vpop.permute.xlu0 %1640  ;;  %v4590_v13 = vld [vmem:[#allocation69_spill] sm:$0xff] }
 0x25f   : > { %v4069_v40 = vadd.f32 %v1398_v21, %v3796_v39  ;;  %1863 = vrot.lane.b32.xlu1 %v1851_v52, %s2366_s15  ;;  %v4573_v39 = vrot.slane %v3831_v60, 1  ;;  %v711_v52 = vadd.f32 %v705_v58, %v624_v29  ;;  %v1270_v45 = vadd.f32 %v1264_v38, %v1131_v26  ;;  %v4581_v21 = vld [vmem:[#allocation25_spill] sm:$0xff]  ;;  %v4582_v54 = vld [vmem:[#allocation64_spill] sm:$0xff]  ;;  %v4584_v26 = vld [vmem:[#allocation82_spill] sm:$0xff]  ;;  %s2164_s15 = sld [smem:[#allocation3 + $0x1c]] }
 0x260   : > { %v975_v0 = vsel %vm524_vm11, %v4577_v59, %v4576_v19  ;;  %v1265_v34 = vsel %vm312_vm9, %v3838_v18, %v4578_v41  ;;  %v355_v60 = vadd.f32 %v349_v3, %v3888_v14  ;;  %v4580_v58 = vrot.slane %v3928_v1, 2  ;;  %v4583_v18 = vld [vmem:[#allocation40_spill] sm:$0xff] }
 0x261   : > { %v625_v27 = vadd.f32 %v4573_v39, %v533_v20  ;;  %v1391_v32 = vpop.permute.xlu1 %1390  ;;  %v846_v20 = vadd.f32 %v840_v36, %v711_v52  ;;  %v561_v29 = vsel %vm524_vm11, %v4582_v54, %v4581_v21  ;;  %v841_v43 = vsel %vm418_vm10, %v4584_v26, %v4583_v18  ;;  %v4586_v36 = vld [vmem:[#allocation97_spill] sm:$0xff]  ;;  %v4587_v30 = vld [vmem:[#allocation104_spill] sm:$0xff]  ;;  %v4597_v21 = vld [vmem:[#allocation106_spill] sm:$0xff] }
 0x262   : > { %v1399_v17 = vsel %vm418_vm10, %v1391_v32, %v4579_v22  ;;  %v1132_v63 = vadd.f32 %v4580_v58, %v1072_v56  ;;  %v1087_v14 = vrot.slane %v4051_v7, 2  ;;  %v461_v42 = vadd.f32 %v455_v24, %v355_v60  ;;  %v4588_v52 = vld [vmem:[#allocation88_spill] sm:$0xff]  ;;  %v4594_v60 = vld [vmem:[#allocation33_spill] sm:$0xff] }
 0x263   : > { %v4099_v38 = vadd.f32 %v1399_v17, %v1270_v45  ;;  %1900 = vrot.lane.b32.xlu1 %v1892_v46, %s2367_s9  ;;  %v712_v3 = vadd.f32 %v706_v48, %v625_v27  ;;  %v981_v1 = vadd.f32 %v975_v0, %v846_v20  ;;  %v976_v46 = vsel %vm524_vm11, %v4586_v36, %v4585_v8  ;;  %v4591_v48 = vld [vmem:[#allocation108_spill] sm:$0xff]  ;;  %v4137_v17 = vpop.permute.xlu0 %1677  ;;  %v4595_v20 = vld [vmem:[#allocation74_spill] sm:$0xff] }
 0x264   : > { %v1271_v56 = vadd.f32 %v1265_v34, %v1132_v63  ;;  %v1897_v39 = vsel %vm1552_vm8, %v1891_v25, %v1896_v35  ;;  %v1925_v45 = vmul.f32 %v3402_v55, %v4588_v52  ;;  %v567_v32 = vadd.f32 %v561_v29, %v461_v42  ;;  %v4596_v63 = vld [vmem:[#allocation89_spill] sm:$0xff] }
 0x265   : > { %v1395_v62 = vpop.permute.xlu1 %1394  ;;  %v847_v61 = vadd.f32 %v841_v43, %v712_v3  ;;  %v4589_v24 = vrot.slane %v3775_v49, 2  ;;  %v1174_v19 = vsel %vm312_vm9, %v4591_v48, %v4590_v13  ;;  %v1923_v25 = vmul.f32 %v4588_v52, %v3564_v23  ;;  %v4598_v43 = vld [vmem:[#allocation43_spill] sm:$0xff]  ;;  %v4599_v42 = vld [vmem:[#allocation85_spill] sm:$0xff] }
 0x266   : > { %v1400_v6 = vsel %vm418_vm10, %v1395_v62, %v4587_v30  ;;  %v4592_v59 = vrot.slane %v3833_v12, 1  ;;  %v4593_v55 = vrot.slane %v3759_v33, 1  ;;  %v1927_v49 = vmul.f32 %v4588_v52, %v3570_v16  ;;  %v4603_v52 = vld [vmem:[#allocation99_spill] sm:$0xff] }
 0x267   : > { %v4119_v7 = vadd.f32 %v1400_v6, %v1271_v56  ;;  %1904 = vrot.lane.b32.xlu1 %v1897_v39, %s2367_s9  ;;  %v1088_v27 = vsel %vm1083_vm7, %v4589_v24, %v1087_v14  ;;  %v982_v41 = vadd.f32 %v976_v46, %v847_v61  ;;  %v750_v58 = vsel %vm312_vm9, %v4595_v20, %v4594_v60  ;;  %v4601_v56 = vld [vmem:[#allocation110_spill] sm:$0xff]  ;;  %v4602_v39 = vld [vmem:[#allocation56_spill] sm:$0xff] }
 0x268   : > { %v638_v0 = vsel %vm614_vm5, %v4593_v55, %v4592_v59  ;;  %v1093_v34 = vadd.f32 %v1088_v27, %v981_v1  ;;  %v1309_v12 = vsel %vm418_vm10, %v3896_v28, %v4596_v63  ;;  %v1936_v54 = vrot.slane %v1925_v45, 3  ;;  %v4600_v1 = vld [vmem:[#allocation71_spill] sm:$0xff]  ;;  %v4606_v55 = vld [vmem:[#allocation112_spill] sm:$0xff] }
 0x269   : > { %v1432_v22 = vpop.permute.xlu1 %1431  ;;  %v643_v29 = vadd.f32 %v638_v0, %v567_v32  ;;  %v885_v3 = vsel %vm418_vm10, %v4599_v42, %v4598_v43  ;;  %v1175_v62 = vsel %vm312_vm9, %v4601_v56, %v4600_v1  ;;  %v1935_v28 = vrot.slane %v1923_v25, 3  ;;  %v4604_v45 = vld [vmem:[#allocation91_spill] sm:$0xff]  ;;  %v4605_v32 = vld [vmem:[#allocation109_spill] sm:$0xff] }
 0x26a   : > { %v1443_v33 = vsel %vm524_vm11, %v1432_v22, %v4597_v21  ;;  %v1180_v18 = vadd.f32 %v1174_v19, %v1093_v34  ;;  %v1094_v36 = vadd.f32 %v1087_v14, %v982_v41  ;;  %v1941_v6 = vrot.slane %v1927_v49, 3  ;;  %v4169_v14 = vpop.permute.xlu0 %1681  ;;  %v4174_v41 = vld [vmem:[#allocation2 + $0x10] sm:$0xff]  ;;  %v4607_v34 = vld [vmem:[#allocation93_spill] sm:$0xff]  ;;  %v4610_v63 = vld [vmem:[#allocation75_spill] sm:$0xff] }
 0x26b   : > { %v4148_v26 = vadd.f32 %v1443_v33, %v3884_v44  ;;  %1908 = vrot.lane.b32.xlu1 %v1896_v35, %s2367_s9  ;;  %v756_v8 = vadd.f32 %v750_v58, %v643_v29  ;;  %v1020_v44 = vsel %vm524_vm11, %v4603_v52, %v4602_v39  ;;  %v1310_v35 = vsel %vm418_vm10, %v3934_v10, %v4604_v45  ;;  %v1542_v52 = vld [vmem:[#allocation2] sm:$0xf8] }
 0x26c   : > { %v1315_v46 = vadd.f32 %v1309_v12, %v1180_v18  ;;  %v1937_v24 = vsel %vm1552_vm8, %v1935_v28, %v1936_v54  ;;  %v1181_v13 = vadd.f32 %v1175_v62, %v1094_v36  ;;  %v1942_v10 = vsel %vm1552_vm8, %v1936_v54, %v1941_v6  ;;  %v4611_v18 = vld [vmem:[#allocation96_spill] sm:$0xff] }
 0x26d   : > { %v1436_v30 = vpop.permute.xlu1 %1435  ;;  %v891_v27 = vadd.f32 %v885_v3, %v756_v8  ;;  %v1970_v22 = vmul.f32 %v4174_v41, %v4607_v34  ;;  %v4608_v60 = vrot.slane %v3915_v47, 2  ;;  %v4609_v20 = vrot.slane %v3855_v15, 2 }
 0x26e   : > { %v1444_v61 = vsel %vm524_vm11, %v1436_v30, %v4605_v32  ;;  %v1316_v25 = vadd.f32 %v1310_v35, %v1181_v13  ;;  %v1219_v12 = vsel %vm312_vm9, %v3719_v37, %v4610_v63  ;;  %v1968_v21 = vmul.f32 %v4607_v34, %v3564_v23  ;;  %v4191_v29 = vpop.permute.xlu0 %1685  ;;  %v4612_v13 = vld [vmem:[#allocation20_spill] sm:$0xff] }
 0x26f   : > { %v4166_v48 = vadd.f32 %v1444_v61, %v1315_v46  ;;  %1945 = vrot.lane.b32.xlu1 %v1937_v24, %s2367_s9  ;;  %v1026_v19 = vadd.f32 %v1020_v44, %v891_v27  ;;  %v1107_v58 = vsel %vm1083_vm7, %v4609_v20, %v4608_v60  ;;  %v1354_v43 = vsel %vm418_vm10, %v3991_v57, %v4611_v18 }
 0x270   : > { %v1981_v47 = vrot.slane %v1970_v22, 3  ;;  %v1972_v42 = vmul.f32 %v4607_v34, %v3570_v16  ;;  %v1980_v23 = vrot.slane %v1968_v21, 3  ;;  %v4613_v34 = vld [vmem:[#allocation41_spill] sm:$0xff]  ;;  %v1565_v20 = vstv %s2164_s15 }
 0x271   : > { %v1440_v59 = vpop.permute.xlu1 %1439  ;;  %v1112_v33 = vadd.f32 %v1107_v58, %v1026_v19  ;;  %v1567_v63 = vmul.f32 %v4174_v41, %v1565_v20 }
 0x272   : > { %v1445_v0 = vsel %vm524_vm11, %v1440_v59, %v4606_v55  ;;  %v1982_v57 = vsel %vm1552_vm8, %v1980_v23, %v1981_v47  ;;  %v1986_v28 = vrot.slane %v1972_v42, 3  ;;  %v4210_v16 = vpop.permute.xlu0 %1722 }
 0x273   : > { %v4178_v49 = vadd.f32 %v1445_v0, %v1316_v25  ;;  %1949 = vrot.lane.b32.xlu1 %v1942_v10, %s2367_s9  ;;  %v1225_v3 = vadd.f32 %v1219_v12, %v1112_v33  ;;  %v1566_v33 = vmul.f32 %v1565_v20, %v1542_v52  ;;  %v1573_v18 = vrot.slane %v1567_v63, 3 }
 0x274   : > { %v1987_v36 = vsel %vm1552_vm8, %v1981_v47, %v1986_v28 }
 0x275   : > { %v1477_v54 = vpop.permute.xlu1 %1476  ;;  %v1360_v1 = vadd.f32 %v1354_v43, %v1225_v3  ;;  %v1572_v3 = vrot.slane %v1566_v33, 3 }
 0x276   : > { %v1488_v15 = vsel %vm524_vm11, %v1477_v54, %v3734_v51  ;;  %v4219_v30 = vpop.permute.xlu0 %1726 }
 0x277   : > { %v4201_v37 = vadd.f32 %v1488_v15, %v3973_v31  ;;  %1953 = vrot.lane.b32.xlu1 %v1941_v6, %s2367_s9  ;;  %v1574_v23 = vsel %vm1552_vm8, %v1572_v3, %v1573_v18 }
 0x279   : > { %v1481_v56 = vpop.permute.xlu1 %1480 }
 0x27a   : > { %v1489_v62 = vsel %vm524_vm11, %v1481_v56, %v3781_v2  ;;  %v1580_v56 = vadd.f32 %v1574_v23, %v4201_v37 }
 0x27b   : > { %v4207_v51 = vadd.f32 %v1489_v62, %v1360_v1  ;;  %1990 = vrot.lane.b32.xlu1 %v1982_v57, %s2367_s9 }
 0x27d   : > { %v1485_v31 = vpop.permute.xlu1 %1484 }
 0x27e   : > { %v1490_v8 = vsel %vm524_vm11, %v1485_v31, %v3821_v50  ;;  %v1545_v50 = vstv %s2163_s4 }
 0x27f   : > { %v4216_v46 = vadd.f32 %v1490_v8, %v4033_v11  ;;  %1994 = vrot.lane.b32.xlu1 %v1987_v36, %s2367_s9  ;;  %v1547_v44 = vmul.f32 %v4174_v41, %v1545_v50  ;;  %v1543_v11 = vld [vmem:[#allocation2 + $0x20] sm:$0x3f]  ;;  %v1546_v32 = vmul.f32 %v1545_v50, %v1542_v52 }
 0x280   : > { %v1548_v24 = vmul.f32 %v1545_v50, %v1543_v11  ;;  %v1568_v43 = vmul.f32 %v1565_v20, %v1543_v11 }
 0x281   : > { %v1522_v2 = vpop.permute.xlu1 %1521  ;;  %v1553_v25 = vrot.slane %v1546_v32, 3 }
 0x282   : > { %v1533_v6 = vsel %vm524_vm11, %v1522_v2, %v3873_v53  ;;  %v4233_v53 = vpop.permute.xlu0 %1730  ;;  %v1556_v0 = vrot.slane %v1548_v24, 3 }
 0x283   : > { %v4224_v39 = vadd.f32 %v1533_v6, %v4069_v40  ;;  %1998 = vrot.lane.b32.xlu1 %v1986_v28, %s2367_s9  ;;  %v1554_v40 = vrot.slane %v1547_v44, 3  ;;  %s2165_s9 = sld [smem:[#allocation3 + $0x2c]] }
 0x284   : > { %v1563_v15 = vadd.f32 %v1556_v0, %v4178_v49 }
 0x285   : > { %v1526_v45 = vpop.permute.xlu1 %1525  ;;  %v1555_v55 = vsel %vm1552_vm8, %v1553_v25, %v1554_v40  ;;  %v1557_v58 = vsel %vm1552_vm8, %v1554_v40, %v1556_v0 }
 0x286   : > { %v1534_v35 = vsel %vm524_vm11, %v1526_v45, %v3918_v5  ;;  %v1561_v10 = vadd.f32 %v1555_v55, %v4148_v26 }
 0x287   : > { %v4231_v61 = vadd.f32 %v1534_v35, %v4099_v38  ;;  %v4240_v38 = vpop.permute.xlu0 %1767 }
 0x289   : > { %v1530_v27 = vpop.permute.xlu1 %1529  ;;  %v1584_v49 = vstv %s2165_s9 }
 0x28a   : > { %v1535_v19 = vsel %vm524_vm11, %v1530_v27, %v4612_v13  ;;  %v1585_v6 = vmul.f32 %v1584_v49, %v1542_v52  ;;  %v1587_v45 = vmul.f32 %v1584_v49, %v1543_v11 }
 0x28b   : > { %v1541_v59 = vadd.f32 %v1535_v19, %v4119_v7  ;;  %v1562_v7 = vadd.f32 %v1557_v58, %v4166_v48  ;;  %v4253_v54 = vpop.permute.xlu0 %1771 }
 0x28c   : > { %v1591_v40 = vrot.slane %v1585_v6, 3  ;;  %v1594_v24 = vrot.slane %v1587_v45, 3 }
 0x28d   : > { %v1631_v5 = vpop.permute.xlu1 %1630 }
 0x28e   : > { %v1642_v22 = vsel %vm312_vm9, %v1631_v5, %v4613_v34  ;;  %v1601_v5 = vadd.f32 %v1594_v24, %v1541_v59 }
 0x28f   : > { %v4244_v60 = vadd.f32 %v1642_v22, %v1561_v10  ;;  %v4262_v62 = vpop.permute.xlu0 %1775 }
 0x291   : > { %v1635_v12 = vpop.permute.xlu1 %1634 }
 0x292   : > { %v1643_v21 = vsel %vm312_vm9, %v1635_v12, %v4058_v4  ;;  %v1575_v4 = vrot.slane %v1568_v43, 3 }
 0x293   : > { %v4251_v26 = vadd.f32 %v1643_v21, %v1562_v7  ;;  %v1813_v50 = vpop.permute.xlu0 %1812 }
 0x294   : > { %v1576_v31 = vsel %vm1552_vm8, %v1573_v18, %v1575_v4 }
 0x295   : > { %v1639_v47 = vpop.permute.xlu1 %1638  ;;  %v1581_v8 = vadd.f32 %v1576_v31, %v4207_v51 }
 0x296   : > { %v1644_v42 = vsel %vm312_vm9, %v1639_v47, %v4102_v9  ;;  %v1586_v9 = vmul.f32 %v4174_v41, %v1584_v49 }
 0x297   : > { %v4258_v48 = vadd.f32 %v1644_v42, %v1563_v15  ;;  %v1817_v52 = vpop.permute.xlu0 %1816 }
 0x298   : > { %v1592_v44 = vrot.slane %v1586_v9, 3 }
 0x299   : > { %v1676_v1 = vpop.permute.xlu1 %1675 }
 0x29a   : > { %v1687_v57 = vsel %vm312_vm9, %v1676_v1, %v4137_v17  ;;  %v1582_v17 = vadd.f32 %v1575_v4, %v4216_v46  ;;  %v1593_v51 = vsel %vm1552_vm8, %v1591_v40, %v1592_v44  ;;  %v1595_v46 = vsel %vm1552_vm8, %v1592_v44, %v1594_v24 }
 0x29b   : > { %v4266_v28 = vadd.f32 %v1687_v57, %v1580_v56  ;;  %v1600_v19 = vadd.f32 %v1595_v46, %v4231_v61  ;;  %v1821_v0 = vpop.permute.xlu0 %1820 }
 0x29d   : > { %v1680_v36 = vpop.permute.xlu1 %1679 }
 0x29e   : > { %v1688_v2 = vsel %vm312_vm9, %v1680_v36, %v4169_v14  ;;  %v1599_v14 = vadd.f32 %v1593_v51, %v4224_v39 }
 0x29f   : > { %v4273_v37 = vadd.f32 %v1688_v2, %v1581_v8  ;;  %v1858_v22 = vpop.permute.xlu0 %1857 }
 0x2a1   : > { %v1684_v35 = vpop.permute.xlu1 %1683 }
 0x2a2   : > { %v1689_v32 = vsel %vm312_vm9, %v1684_v35, %v4191_v29 }
 0x2a3   : > { %v4278_v41 = vadd.f32 %v1689_v32, %v1582_v17  ;;  %v1862_v61 = vpop.permute.xlu0 %1861 }
 0x2a5   : > { %v1721_v27 = vpop.permute.xlu1 %1720 }
 0x2a6   : > { %v1732_v13 = vsel %vm312_vm9, %v1721_v27, %v4210_v16 }
 0x2a7   : > { %v4284_v11 = vadd.f32 %v1732_v13, %v1599_v14  ;;  %v4296_v7 = vpop.permute.xlu0 %1865 }
 0x2a9   : > { %v1725_v29 = vpop.permute.xlu1 %1724 }
 0x2aa   : > { %v1733_v25 = vsel %vm312_vm9, %v1725_v29, %v4219_v30 }
 0x2ab   : > { %v4290_v55 = vadd.f32 %v1733_v25, %v1600_v19  ;;  %v1903_v12 = vpop.permute.xlu0 %1902 }
 0x2ad   : > { %v1729_v39 = vpop.permute.xlu1 %1728 }
 0x2ae   : > { %v1734_v10 = vsel %vm312_vm9, %v1729_v39, %v4233_v53 }
 0x2af   : > { %v4294_v16 = vadd.f32 %v1734_v10, %v1601_v5  ;;  %v1907_v33 = vpop.permute.xlu0 %1906 }
 0x2b1   : > { %v1766_v34 = vpop.permute.xlu1 %1765 }
 0x2b2   : > { %v1777_v15 = vsel %vm418_vm10, %v1766_v34, %v4240_v38 }
 0x2b3   : > { %v1911_v53 = vpop.permute.xlu0 %1910  ;;  %v1783_v47 = vadd.f32 %v1777_v15, %v4244_v60 }
 0x2b5   : > { %v1770_v20 = vpop.permute.xlu1 %1769 }
 0x2b6   : > { %v1778_v23 = vsel %vm418_vm10, %v1770_v20, %v4253_v54 }
 0x2b7   : > { %v1948_v3 = vpop.permute.xlu0 %1947  ;;  %v1784_v38 = vadd.f32 %v1778_v23, %v4251_v26 }
 0x2b9   : > { %v1774_v58 = vpop.permute.xlu1 %1773 }
 0x2ba   : > { %v1779_v56 = vsel %vm418_vm10, %v1774_v58, %v4262_v62 }
 0x2bb   : > { %v1952_v49 = vpop.permute.xlu0 %1951  ;;  %v1785_v31 = vadd.f32 %v1779_v56, %v4258_v48 }
 0x2bd   : > { %v1811_v63 = vpop.permute.xlu1 %1810 }
 0x2be   : > { %v1822_v8 = vsel %vm418_vm10, %v1811_v63, %v1813_v50 }
 0x2bf   : > { %v1828_v26 = vadd.f32 %v1822_v8, %v4266_v28  ;;  %v1956_v62 = vpop.permute.xlu0 %1955 }
 0x2c1   : > { %v1815_v30 = vpop.permute.xlu1 %1814 }
 0x2c2   : > { %v1823_v44 = vsel %vm418_vm10, %v1815_v30, %v1817_v52 }
 0x2c3   : > { %v1829_v48 = vadd.f32 %v1823_v44, %v4273_v37  ;;  %v1993_v28 = vpop.permute.xlu0 %1992 }
 0x2c5   : > { %v1819_v21 = vpop.permute.xlu1 %1818 }
 0x2c6   : > { %v1824_v50 = vsel %vm418_vm10, %v1819_v21, %v1821_v0 }
 0x2c7   : > { %v1830_v51 = vadd.f32 %v1824_v50, %v4278_v41  ;;  %v1997_v46 = vpop.permute.xlu0 %1996 }
 0x2c9   : > { %v1856_v59 = vpop.permute.xlu1 %1855 }
 0x2ca   : > { %v1867_v27 = vsel %vm418_vm10, %v1856_v59, %v1858_v22 }
 0x2cb   : > { %v1873_v37 = vadd.f32 %v1867_v27, %v4284_v11  ;;  %v2001_v11 = vpop.permute.xlu0 %2000 }
 0x2cd   : > { %v1860_v18 = vpop.permute.xlu1 %1859 }
 0x2ce   : > { %v1868_v19 = vsel %vm418_vm10, %v1860_v18, %v1862_v61 }
 0x2cf   : > { %v1874_v41 = vadd.f32 %v1868_v19, %v4290_v55 }
 0x2d1   : > { %v1864_v43 = vpop.permute.xlu1 %1863 }
 0x2d2   : > { %v1869_v5 = vsel %vm418_vm10, %v1864_v43, %v4296_v7 }
 0x2d3   : > { %v1875_v34 = vadd.f32 %v1869_v5, %v4294_v16 }
 0x2d5   : > { %v1901_v42 = vpop.permute.xlu1 %1900 }
 0x2d6   : > { %v1912_v4 = vsel %vm524_vm11, %v1901_v42, %v1903_v12 }
 0x2d7   : > { %v1918_v1 = vadd.f32 %v1912_v4, %v1783_v47 }
 0x2d9   : > { %2011 = vst [vmem:[%s4308_s19] sm:$0xff] %v1918_v1  ;;  %v1905_v60 = vpop.permute.xlu1 %1904 }
 0x2da   : > { %v1913_v54 = vsel %vm524_vm11, %v1905_v60, %v1907_v33 }
 0x2db   : > { %v1919_v57 = vadd.f32 %v1913_v54, %v1784_v38 }
 0x2dd   : > { %2012 = vst [vmem:[%s4308_s19 + $0x8] sm:$0xff] %v1919_v57  ;;  %v1909_v9 = vpop.permute.xlu1 %1908 }
 0x2de   : > { %v1914_v36 = vsel %vm524_vm11, %v1909_v9, %v1911_v53 }
 0x2df   : > { %v1920_v2 = vadd.f32 %v1914_v36, %v1785_v31 }
 0x2e1   : > { %2013 = vst [vmem:[%s4308_s19 + $0x10] sm:$0x7] %v1920_v2  ;;  %v1946_v6 = vpop.permute.xlu1 %1945 }
 0x2e2   : > { %v1957_v45 = vsel %vm524_vm11, %v1946_v6, %v1948_v3 }
 0x2e3   : > { %v1963_v17 = vadd.f32 %v1957_v45, %v1828_v26 }
 0x2e5   : > { %2175 = vst [vmem:[%s4308_s19 + $0x18] sm:$0xff] %v1963_v17  ;;  %v1950_v35 = vpop.permute.xlu1 %1949 }
 0x2e6   : > { %v1958_v32 = vsel %vm524_vm11, %v1950_v35, %v1952_v49 }
 0x2e7   : > { %v1964_v40 = vadd.f32 %v1958_v32, %v1829_v48 }
 0x2e9   : > { %2176 = vst [vmem:[%s4308_s19 + $0x20] sm:$0xff] %v1964_v40  ;;  %v1954_v24 = vpop.permute.xlu1 %1953 }
 0x2ea   : > { %v1959_v14 = vsel %vm524_vm11, %v1954_v24, %v1956_v62 }
 0x2eb   : > { %v1965_v52 = vadd.f32 %v1959_v14, %v1830_v51 }
 0x2ed   : > { %2177 = vst [vmem:[%s4308_s19 + $0x28] sm:$0x7] %v1965_v52  ;;  %v1991_v13 = vpop.permute.xlu1 %1990 }
 0x2ee   : > { %v2002_v29 = vsel %vm524_vm11, %v1991_v13, %v1993_v28 }
 0x2ef   : > { %v2008_v25 = vadd.f32 %v2002_v29, %v1873_v37 }
 0x2f1   : > { %2178 = vst [vmem:[%s4308_s19 + $0x30] sm:$0xff] %v2008_v25  ;;  %v1995_v0 = vpop.permute.xlu1 %1994 }
 0x2f2   : > { %v2003_v39 = vsel %vm524_vm11, %v1995_v0, %v1997_v46 }
 0x2f3   : > { %v2009_v10 = vadd.f32 %v2003_v39, %v1874_v41 }
 0x2f5   : > { %2179 = vst [vmem:[%s4308_s19 + $0x38] sm:$0xff] %v2009_v10  ;;  %v1999_v22 = vpop.permute.xlu1 %1998 }
 0x2f6   : > { %v2004_v20 = vsel %vm524_vm11, %v1999_v22, %v2001_v11 }
 0x2f7   : > { %v2010_v61 = vadd.f32 %v2004_v20, %v1875_v34 }
 0x2f9   : > { %2180 = vst [vmem:[%s4308_s19 + $0x40] sm:$0x7] %v2010_v61 }
 0x2fa PF: > { %p15_p11 = scmp.ge.s32.totalorder %s2410_s17, 4   ;;  %s4614_s12 = smov %s2348_s13 }
 0x2fb   : > { %s4615_s13 = smov %s2352_s14  ;;  %s4616_s14 = smov %s2420_s20 }
 0x2fc   : > { %s4617_s15 = smov %s2410_s17  ;;  %17 = sbr.rel (!%p15_p11) target bundleno = 5 (0x5), region = 84 }
 0x303   :  { %2043 = vsyncpa [#allocation4], 1 }
 0x304   :  { %2045 = vsyncpa [#allocation4 + $0x1], 1 }
 0x305   :  { %2046 = vsyncpa [#allocation5], 1 }
 0x306   :  { %2048 = vsyncpa [#allocation5 + $0x1], 1 }
 0x307   :  { %2049 = vsyncpa [#allocation6], 1 }
 0x308   :  { %2051 = vsyncpa [#allocation6 + $0x1], 1 }

</bundles_post_ra>
